<compile_context>
chip_gen: v6e
topology: v6e:2x2x1
jax: 0.10.0
libtpu: 0.0.40
codegen_flags: <defaults>
</compile_context>

<pallas_src>
import math
import functools

import jax
import jax.numpy as jnp
from jax.experimental import pallas as pl
from jax.experimental.pallas import tpu as pltpu


def _encoder_layer_kernel(
    x_ref, maskb_ref,
    ln1_a_ref, ln1_b_ref,
    wqkv_ref, bqkv_ref,
    wo_ref, bo_ref,
    ln2_a_ref, ln2_b_ref,
    w1_ref, b1_ref, w2_ref, b2_ref,
    o_ref,
    *, heads: int, eps: float,
):
    f32 = jnp.float32
    bf16 = jnp.bfloat16

    bb, S, D = x_ref.shape
    d_k = D // heads
    R = bb * S

    def normalizer(v, alpha, bias):
        # torch: alpha * (v - mean) / (std + eps) + bias, std unbiased (N-1).
        # Exact divide here (accuracy); approx reciprocal reserved for the softmax.
        mean = jnp.mean(v, axis=-1, keepdims=True)
        c = v - mean
        var = jnp.sum(c * c, axis=-1, keepdims=True) * (1.0 / (D - 1))
        return alpha * (c / (jnp.sqrt(var) + eps)) + bias

    x = x_ref[...].astype(f32).reshape(R, D)           # collapse (bb, S) -> rows

    # ---- sublayer 1: multi-head self-attention with residual ----
    x2 = normalizer(x, ln1_a_ref[...], ln1_b_ref[...]).astype(bf16)

    # Fused lane-dense QKV: one (R, D) @ (D, 3D) matmul (score scale folded into Wq/bq).
    qkv = jnp.dot(x2, wqkv_ref[...], preferred_element_type=f32) + bqkv_ref[...]
    qkv = qkv.reshape(bb, S, 3 * D)                    # leading-dim split only (free)

    bias = maskb_ref[...].astype(f32)                  # (bb, S, S) additive mask bias

    attn = jnp.zeros((R, D), f32)
    # Static loop over heads only (small); attention batched over bb inside each head.
    for h in range(heads):
        q = qkv[:, :, h * d_k:(h + 1) * d_k].astype(bf16)              # (bb, S, d_k)
        k = qkv[:, :, D + h * d_k:D + (h + 1) * d_k].astype(bf16)
        v = qkv[:, :, 2 * D + h * d_k:2 * D + (h + 1) * d_k].astype(bf16)

        s = jnp.einsum("bqd,bkd->bqk", q, k, preferred_element_type=f32) + bias
        m = jnp.max(s, axis=-1, keepdims=True)
        e = jnp.exp(s - m)
        p = e * pl.reciprocal(jnp.sum(e, axis=-1, keepdims=True), approx=True)  # EUP
        # attention dropout skipped (identity in eval mode)
        ctx = jnp.einsum("bqk,bkd->bqd", p.astype(bf16), v,
                         preferred_element_type=f32)                    # (bb, S, d_k)

        # Head-concat + Wo folded into a K=d_k matmul accumulated over heads (MXU acc,
        # no (heads, S, D) intermediate, no cross-sublane reduce, no concat).
        attn = attn + jnp.dot(ctx.reshape(R, d_k).astype(bf16), wo_ref[h],
                              preferred_element_type=f32)

    x = x + attn + bo_ref[...]                         # dropout_1 = identity

    # ---- sublayer 2: feed-forward with residual ----
    x2 = normalizer(x, ln2_a_ref[...], ln2_b_ref[...]).astype(bf16)
    h1 = jnp.dot(x2, w1_ref[...], preferred_element_type=f32) + b1_ref[...]
    h1 = jnp.maximum(h1, 0.0).astype(bf16)             # ReLU; FF dropout = identity
    ff = jnp.dot(h1, w2_ref[...], preferred_element_type=f32) + b2_ref[...]

    # NOTE: with D < 128 this store is lane-masked; acceptable for toy shapes only.
    o_ref[...] = (x + ff).reshape(bb, S, D).astype(o_ref.dtype)


def _vmem_budget_bytes():
    """Generation-aware scoped-VMEM budget (128 MiB chips -> ~100 MiB, v7x 64 MiB -> ~52 MiB)."""
    cap = 64 * 2**20
    try:
        info = pltpu.get_tpu_info()
        cap_attr = int(getattr(info, "vmem_capacity_bytes", cap))
        if cap_attr > 0:
            cap = cap_attr
    except Exception:
        pass
    if cap >= 96 * 2**20:
        return 100 * 2**20                      # v5e / v6e (128 MiB physical)
    return min(52 * 2**20, int(cap * 0.8))      # v7x (64 MiB physical): leave headroom


def _vmem_bytes_estimate(bb, S, D, d_ff, heads):
    """Conservative per-step VMEM footprint (blocks + worst-case simultaneously-live temps)."""
    f32b, bf16b = 4, 2
    d_k = D // heads
    R = bb * S
    blocks = (
        2 * bb * S * D * f32b                              # x (double-buffered)
        + 2 * bb * S * S * bf16b                           # mask bias (double-buffered)
        + 2 * bb * S * D * f32b                            # output (double-buffered)
        + (3 * D * D + heads * d_k * D + 2 * D * d_ff) * bf16b   # weights (single-buffered)
        + (3 * D + 5 * D + d_ff) * f32b                    # biases + layernorm params
    )
    live = (
        R * 3 * D * f32b                                   # fused qkv (f32)
        + heads * bb * S * S * f32b * 2                    # scores + p, all heads assumed live
        + heads * bb * S * d_k * f32b                      # ctx temps
        + 4 * R * D * f32b                                 # residual x / x2 / attn acc / ff
        + R * d_ff * (f32b + bf16b)                        # h1 f32 then bf16
    )
    return blocks + live + (4 << 20)                       # compiler scratch headroom


def _pick_batch_block(B, S, D, d_ff, heads, budget):
    """Largest divisor of B whose footprint fits the VMEM budget; keep grid >= 2 steps when
    B >= 2 (v7x has 2 TensorCores sharded over the 'parallel' grid axis)."""
    best = 1
    for cand in range(1, B + 1):
        if B % cand:
            continue
        if B >= 2 and B // cand < 2:
            continue
        if cand * S > 2048:                                # bound per-step latency
            continue
        if _vmem_bytes_estimate(cand, S, D, d_ff, heads) <= budget:
            best = cand
    return best


def encoder_layer(x, mask, params, *, heads, eps=1e-6, batch_block=None):
    """x: (B, S, D) f32, mask: (B, S, S) int. Returns (B, S, D) f32."""
    B, S, D = x.shape
    assert D % heads == 0
    d_k = D // heads
    d_ff = params["w1"].shape[1]
    f32, bf16 = jnp.float32, jnp.bfloat16

    budget = _vmem_budget_bytes()
    bb = _pick_batch_block(B, S, D, d_ff, heads, budget) if batch_block is None else batch_block
    assert B % bb == 0, "batch_block must divide the batch size"

    # ---- host-side packing (layout plumbing; in a real model pre-pack once) ----
    scale = 1.0 / math.sqrt(d_k)
    mask_bias = jnp.where(mask == 0, jnp.float32(-1e9), jnp.float32(0.0)).astype(bf16)
    # Fused QKV weight/bias (score scale folded into the Q half).
    wqkv = jnp.concatenate(
        [params["wq"] * scale, params["wk"], params["wv"]], axis=1).astype(bf16)   # (D, 3D)
    bqkv = jnp.concatenate(
        [params["bq"] * scale, params["bk"], params["bv"]], axis=1).astype(f32)    # (1, 3D)
    wo3 = params["wo"].reshape(heads, d_k, D).astype(bf16)                          # per-head Wo
    w1b = params["w1"].astype(bf16)
    w2b = params["w2"].astype(bf16)

    def const_spec(shape):
        # Constant-index blocks never change across the grid -> single VMEM buffer.
        n = len(shape)
        return pl.BlockSpec(shape, lambda i: (0,) * n, pipeline_mode=pl.Buffered(1))

    kernel = functools.partial(_encoder_layer_kernel, heads=heads, eps=eps)

    return pl.pallas_call(
        kernel,
        out_shape=jax.ShapeDtypeStruct((B, S, D), jnp.float32),
        grid_spec=pltpu.PrefetchScalarGridSpec(
            num_scalar_prefetch=0,
            grid=(B // bb,),
            in_specs=[
                pl.BlockSpec((bb, S, D), lambda i: (i, 0, 0)),      # x
                pl.BlockSpec((bb, S, S), lambda i: (i, 0, 0)),      # additive mask bias
                const_spec((1, D)), const_spec((1, D)),             # ln1 alpha, bias
                const_spec((D, 3 * D)), const_spec((1, 3 * D)),     # fused Wqkv, bqkv
                const_spec((heads, d_k, D)), const_spec((1, D)),    # Wo (per head), bo
                const_spec((1, D)), const_spec((1, D)),             # ln2 alpha, bias
                const_spec((D, d_ff)), const_spec((1, d_ff)),       # W1, b1
                const_spec((d_ff, D)), const_spec((1, D)),          # W2, b2
            ],
            out_specs=pl.BlockSpec((bb, S, D), lambda i: (i, 0, 0)),
        ),
        compiler_params=pltpu.CompilerParams(
            dimension_semantics=("parallel",),
            vmem_limit_bytes=int(budget),
        ),
    )(
        x, mask_bias,
        params["ln1_a"], params["ln1_b"],
        wqkv, bqkv, wo3, params["bo"],
        params["ln2_a"], params["ln2_b"],
        w1b, params["b1"], w2b, params["b2"],
    )


def encoder_layer_ref(x, mask, params, *, heads, eps=1e-6):
    """Pure-JAX f32 reference mirroring the PyTorch forward (eval mode)."""
    B, S, D = x.shape
    d_k = D // heads

    def normalizer(v, alpha, bias):
        mean = jnp.mean(v, axis=-1, keepdims=True)
        c = v - mean
        std = jnp.sqrt(jnp.sum(c * c, axis=-1, keepdims=True) / (D - 1))
        return alpha * c / (std + eps) + bias

    x2 = normalizer(x, params["ln1_a"], params["ln1_b"])
    q = x2 @ params["wq"] + params["bq"]
    k = x2 @ params["wk"] + params["bk"]
    v = x2 @ params["wv"] + params["bv"]
    q = q.reshape(B, S, heads, d_k).transpose(0, 2, 1, 3)
    k = k.reshape(B, S, heads, d_k).transpose(0, 2, 1, 3)
    v = v.reshape(B, S, heads, d_k).transpose(0, 2, 1, 3)
    scores = jnp.einsum("bhqd,bhkd->bhqk", q, k) / math.sqrt(d_k)
    scores = jnp.where(mask[:, None, :, :] == 0, -1e9, scores)
    scores = jax.nn.softmax(scores, axis=-1)
    attn = jnp.einsum("bhqk,bhkd->bhqd", scores, v)
    concat = attn.transpose(0, 2, 1, 3).reshape(B, S, D)
    x = x + (concat @ params["wo"] + params["bo"])

    x2 = normalizer(x, params["ln2_a"], params["ln2_b"])
    h1 = jnp.maximum(x2 @ params["w1"] + params["b1"], 0.0)
    return x + (h1 @ params["w2"] + params["b2"])


def make_params(key, d_model, d_ff):
    ks = jax.random.split(key, 8)
    s_in = 1.0 / math.sqrt(d_model)
    s_ff = 1.0 / math.sqrt(d_ff)
    return {
        "ln1_a": jnp.ones((1, d_model), jnp.float32),
        "ln1_b": jnp.zeros((1, d_model), jnp.float32),
        "ln2_a": jnp.ones((1, d_model), jnp.float32),
        "ln2_b": jnp.zeros((1, d_model), jnp.float32),
        "wq": jax.random.uniform(ks[0], (d_model, d_model), jnp.float32, -s_in, s_in),
        "bq": jax.random.uniform(ks[1], (1, d_model), jnp.float32, -s_in, s_in),
        "wk": jax.random.uniform(ks[2], (d_model, d_model), jnp.float32, -s_in, s_in),
        "bk": jnp.zeros((1, d_model), jnp.float32),
        "wv": jax.random.uniform(ks[3], (d_model, d_model), jnp.float32, -s_in, s_in),
        "bv": jnp.zeros((1, d_model), jnp.float32),
        "wo": jax.random.uniform(ks[4], (d_model, d_model), jnp.float32, -s_in, s_in),
        "bo": jnp.zeros((1, d_model), jnp.float32),
        "w1": jax.random.uniform(ks[5], (d_model, d_ff), jnp.float32, -s_in, s_in),
        "b1": jax.random.uniform(ks[6], (1, d_ff), jnp.float32, -s_in, s_in),
        "w2": jax.random.uniform(ks[7], (d_ff, d_model), jnp.float32, -s_ff, s_ff),
        "b2": jnp.zeros((1, d_model), jnp.float32),
    }


if __name__ == "__main__":
    B, S, D, HEADS = 2, 8, 32, 4
    D_FF = 2048  # FeedForward default d_ff

    key = jax.random.PRNGKey(0)
    k_x, k_p = jax.random.split(key)
    x = jax.random.normal(k_x, (B, S, D), jnp.float32)
    # lower-triangular mask; 0 entries are masked with -1e9
    mask = jnp.tril(jnp.ones((S, S), jnp.int32))[None].repeat(B, axis=0)

    params = make_params(k_p, D, D_FF)

    out = encoder_layer(x, mask, params, heads=HEADS)
    out = jax.block_until_ready(out)

    ref = encoder_layer_ref(x, mask, params, heads=HEADS)
    assert out.shape == (B, S, D)
    max_err = float(jnp.max(jnp.abs(out - ref)))
    # bf16 MXU operands + EUP approx softmax reciprocal vs. an all-f32 reference.
    assert jnp.allclose(out, ref, rtol=3e-2, atol=3e-2), max_err

    print("KERNEL_OK")
</pallas_src>

<mosaic_0001>
module attributes {stable_mosaic.version = 11 : i64} {
  func.func @_encoder_layer_kernel(%arg0: i32, %arg1: memref<1x8x32xf32, #tpu.memory_space<vmem>>, %arg2: memref<1x8x8xbf16, #tpu.memory_space<vmem>>, %arg3: memref<1x32xf32, #tpu.memory_space<vmem>>, %arg4: memref<1x32xf32, #tpu.memory_space<vmem>>, %arg5: memref<32x96xbf16, #tpu.memory_space<vmem>>, %arg6: memref<1x96xf32, #tpu.memory_space<vmem>>, %arg7: memref<4x8x32xbf16, #tpu.memory_space<vmem>>, %arg8: memref<1x32xf32, #tpu.memory_space<vmem>>, %arg9: memref<1x32xf32, #tpu.memory_space<vmem>>, %arg10: memref<1x32xf32, #tpu.memory_space<vmem>>, %arg11: memref<32x2048xbf16, #tpu.memory_space<vmem>>, %arg12: memref<1x2048xf32, #tpu.memory_space<vmem>>, %arg13: memref<2048x32xbf16, #tpu.memory_space<vmem>>, %arg14: memref<1x32xf32, #tpu.memory_space<vmem>>, %arg15: memref<1x8x32xf32, #tpu.memory_space<vmem>>) attributes {dimension_semantics = [#tpu.dimension_semantics<parallel>], iteration_bounds = array<i64: 2>, scalar_prefetch = 0 : i64, scratch_operands = 0 : i64, tpu.core_type = #tpu.core_type<tc>, window_params = [{transform_indices = @transform_0, window_bounds = array<i64: 1, 8, 32>}, {transform_indices = @transform_1, window_bounds = array<i64: 1, 8, 8>}, {pipeline_mode = #tpu.pipeline_mode<synchronous>, transform_indices = @transform_2, window_bounds = array<i64: 1, 32>}, {pipeline_mode = #tpu.pipeline_mode<synchronous>, transform_indices = @transform_3, window_bounds = array<i64: 1, 32>}, {pipeline_mode = #tpu.pipeline_mode<synchronous>, transform_indices = @transform_4, window_bounds = array<i64: 32, 96>}, {pipeline_mode = #tpu.pipeline_mode<synchronous>, transform_indices = @transform_5, window_bounds = array<i64: 1, 96>}, {pipeline_mode = #tpu.pipeline_mode<synchronous>, transform_indices = @transform_6, window_bounds = array<i64: 4, 8, 32>}, {pipeline_mode = #tpu.pipeline_mode<synchronous>, transform_indices = @transform_7, window_bounds = array<i64: 1, 32>}, {pipeline_mode = #tpu.pipeline_mode<synchronous>, transform_indices = @transform_8, window_bounds = array<i64: 1, 32>}, {pipeline_mode = #tpu.pipeline_mode<synchronous>, transform_indices = @transform_9, window_bounds = array<i64: 1, 32>}, {pipeline_mode = #tpu.pipeline_mode<synchronous>, transform_indices = @transform_10, window_bounds = array<i64: 32, 2048>}, {pipeline_mode = #tpu.pipeline_mode<synchronous>, transform_indices = @transform_11, window_bounds = array<i64: 1, 2048>}, {pipeline_mode = #tpu.pipeline_mode<synchronous>, transform_indices = @transform_12, window_bounds = array<i64: 2048, 32>}, {pipeline_mode = #tpu.pipeline_mode<synchronous>, transform_indices = @transform_13, window_bounds = array<i64: 1, 32>}, {transform_indices = @transform_14, window_bounds = array<i64: 1, 8, 32>}]} {
    %c0 = arith.constant 0 : index
    %c0_0 = arith.constant 0 : index
    %c0_1 = arith.constant 0 : index
    %0 = vector.load %arg1[%c0, %c0_0, %c0_1] : memref<1x8x32xf32, #tpu.memory_space<vmem>>, vector<1x8x32xf32>
    %1 = vector.shape_cast %0 : vector<1x8x32xf32> to vector<8x32xf32>
    %c0_2 = arith.constant 0 : index
    %c0_3 = arith.constant 0 : index
    %2 = vector.load %arg3[%c0_2, %c0_3] : memref<1x32xf32, #tpu.memory_space<vmem>>, vector<1x32xf32>
    %c0_4 = arith.constant 0 : index
    %c0_5 = arith.constant 0 : index
    %3 = vector.load %arg4[%c0_4, %c0_5] : memref<1x32xf32, #tpu.memory_space<vmem>>, vector<1x32xf32>
    %cst = arith.constant dense<0.000000e+00> : vector<8xf32>
    %4 = vector.multi_reduction <add>, %1, %cst [1] : vector<8x32xf32> to vector<8xf32>
    %5 = vector.shape_cast %4 : vector<8xf32> to vector<8x1xf32>
    %cst_6 = arith.constant 3.200000e+01 : f32
    %6 = vector.broadcast %cst_6 : f32 to vector<8x1xf32>
    %7 = arith.divf %5, %6 : vector<8x1xf32>
    %8 = vector.broadcast %7 : vector<8x1xf32> to vector<8x32xf32>
    %9 = arith.subf %1, %8 : vector<8x32xf32>
    %10 = arith.mulf %9, %9 : vector<8x32xf32>
    %cst_7 = arith.constant dense<0.000000e+00> : vector<8xf32>
    %11 = vector.multi_reduction <add>, %10, %cst_7 [1] : vector<8x32xf32> to vector<8xf32>
    %12 = vector.shape_cast %11 : vector<8xf32> to vector<8x1xf32>
    %cst_8 = arith.constant 0.0322580636 : f32
    %13 = vector.broadcast %cst_8 : f32 to vector<8x1xf32>
    %14 = arith.mulf %12, %13 : vector<8x1xf32>
    %15 = math.sqrt %14 : vector<8x1xf32>
    %cst_9 = arith.constant 9.99999997E-7 : f32
    %16 = vector.broadcast %cst_9 : f32 to vector<8x1xf32>
    %17 = arith.addf %15, %16 : vector<8x1xf32>
    %18 = vector.broadcast %17 : vector<8x1xf32> to vector<8x32xf32>
    %19 = arith.divf %9, %18 : vector<8x32xf32>
    %20 = vector.broadcast %2 : vector<1x32xf32> to vector<8x32xf32>
    %21 = arith.mulf %20, %19 : vector<8x32xf32>
    %22 = vector.broadcast %3 : vector<1x32xf32> to vector<8x32xf32>
    %23 = arith.addf %21, %22 : vector<8x32xf32>
    %24 = arith.truncf %23 : vector<8x32xf32> to vector<8x32xbf16>
    %c0_10 = arith.constant 0 : index
    %c0_11 = arith.constant 0 : index
    %25 = vector.load %arg5[%c0_10, %c0_11] : memref<32x96xbf16, #tpu.memory_space<vmem>>, vector<32x96xbf16>
    %cst_12 = arith.constant dense<0.000000e+00> : vector<8x96xf32>
    %26 = tpu.matmul %24, %25, %cst_12 {dimension_numbers = #tpu.dot_dimension_numbers<[1], [0], [0], [1], [0, 0, 1, 1], [], []>} : vector<8x32xbf16>, vector<32x96xbf16>, vector<8x96xf32> -> vector<8x96xf32>
    %c0_13 = arith.constant 0 : index
    %c0_14 = arith.constant 0 : index
    %27 = vector.load %arg6[%c0_13, %c0_14] : memref<1x96xf32, #tpu.memory_space<vmem>>, vector<1x96xf32>
    %28 = vector.broadcast %27 : vector<1x96xf32> to vector<8x96xf32>
    %29 = arith.addf %26, %28 : vector<8x96xf32>
    %30 = vector.shape_cast %29 : vector<8x96xf32> to vector<1x8x96xf32>
    %c0_15 = arith.constant 0 : index
    %c0_16 = arith.constant 0 : index
    %c0_17 = arith.constant 0 : index
    %31 = vector.load %arg2[%c0_15, %c0_16, %c0_17] : memref<1x8x8xbf16, #tpu.memory_space<vmem>>, vector<1x8x8xbf16>
    %32 = arith.extf %31 : vector<1x8x8xbf16> to vector<1x8x8xf32>
    %cst_18 = arith.constant 0.000000e+00 : f32
    %33 = vector.broadcast %cst_18 : f32 to vector<8x32xf32>
    %34 = vector.extract_strided_slice %30 {offsets = [0, 0, 0], sizes = [1, 8, 8], strides = [1, 1, 1]} : vector<1x8x96xf32> to vector<1x8x8xf32>
    %35 = arith.truncf %34 : vector<1x8x8xf32> to vector<1x8x8xbf16>
    %36 = vector.extract_strided_slice %30 {offsets = [0, 0, 32], sizes = [1, 8, 8], strides = [1, 1, 1]} : vector<1x8x96xf32> to vector<1x8x8xf32>
    %37 = arith.truncf %36 : vector<1x8x8xf32> to vector<1x8x8xbf16>
    %38 = vector.extract_strided_slice %30 {offsets = [0, 0, 64], sizes = [1, 8, 8], strides = [1, 1, 1]} : vector<1x8x96xf32> to vector<1x8x8xf32>
    %39 = arith.truncf %38 : vector<1x8x8xf32> to vector<1x8x8xbf16>
    "tpu.trace_start"() <{level = 10 : i32, message = "bqd,bkd->bqk"}> : () -> ()
    %cst_19 = arith.constant dense<0.000000e+00> : vector<1x8x8xf32>
    %40 = tpu.matmul %35, %37, %cst_19 {dimension_numbers = #tpu.dot_dimension_numbers<[2], [2], [1], [1], [0, 0, 0, 1, 1, 1], [0], [0]>} : vector<1x8x8xbf16>, vector<1x8x8xbf16>, vector<1x8x8xf32> -> vector<1x8x8xf32>
    "tpu.trace_stop"() : () -> ()
    %41 = arith.addf %40, %32 : vector<1x8x8xf32>
    %cst_20 = arith.constant dense<0xFF800000> : vector<1x8xf32>
    %42 = vector.multi_reduction <maximumf>, %41, %cst_20 [2] : vector<1x8x8xf32> to vector<1x8xf32>
    %43 = vector.shape_cast %42 : vector<1x8xf32> to vector<1x8x1xf32>
    %44 = vector.broadcast %43 : vector<1x8x1xf32> to vector<1x8x8xf32>
    %45 = arith.subf %41, %44 : vector<1x8x8xf32>
    %46 = math.exp %45 : vector<1x8x8xf32>
    %cst_21 = arith.constant dense<0.000000e+00> : vector<1x8xf32>
    %47 = vector.multi_reduction <add>, %46, %cst_21 [2] : vector<1x8x8xf32> to vector<1x8xf32>
    %48 = vector.shape_cast %47 : vector<1x8xf32> to vector<1x8x1xf32>
    %49 = tpu.reciprocal %48 {approx = true} : vector<1x8x1xf32> -> vector<1x8x1xf32>
    %50 = vector.broadcast %49 : vector<1x8x1xf32> to vector<1x8x8xf32>
    %51 = arith.mulf %46, %50 : vector<1x8x8xf32>
    %52 = arith.truncf %51 : vector<1x8x8xf32> to vector<1x8x8xbf16>
    "tpu.trace_start"() <{level = 10 : i32, message = "bqk,bkd->bqd"}> : () -> ()
    %cst_22 = arith.constant dense<0.000000e+00> : vector<1x8x8xf32>
    %53 = tpu.matmul %52, %39, %cst_22 {dimension_numbers = #tpu.dot_dimension_numbers<[2], [1], [1], [2], [0, 0, 0, 1, 1, 2], [0], [0]>} : vector<1x8x8xbf16>, vector<1x8x8xbf16>, vector<1x8x8xf32> -> vector<1x8x8xf32>
    "tpu.trace_stop"() : () -> ()
    %54 = vector.shape_cast %53 : vector<1x8x8xf32> to vector<8x8xf32>
    %55 = arith.truncf %54 : vector<8x8xf32> to vector<8x8xbf16>
    %c0_23 = arith.constant 0 : index
    %c0_24 = arith.constant 0 : index
    %c0_25 = arith.constant 0 : index
    %56 = vector.load %arg7[%c0_23, %c0_24, %c0_25] : memref<4x8x32xbf16, #tpu.memory_space<vmem>>, vector<1x8x32xbf16>
    %57 = vector.shape_cast %56 : vector<1x8x32xbf16> to vector<8x32xbf16>
    %cst_26 = arith.constant dense<0.000000e+00> : vector<8x32xf32>
    %58 = tpu.matmul %55, %57, %cst_26 {dimension_numbers = #tpu.dot_dimension_numbers<[1], [0], [0], [1], [0, 0, 1, 1], [], []>} : vector<8x8xbf16>, vector<8x32xbf16>, vector<8x32xf32> -> vector<8x32xf32>
    %59 = arith.addf %33, %58 : vector<8x32xf32>
    %60 = vector.extract_strided_slice %30 {offsets = [0, 0, 8], sizes = [1, 8, 8], strides = [1, 1, 1]} : vector<1x8x96xf32> to vector<1x8x8xf32>
    %61 = arith.truncf %60 : vector<1x8x8xf32> to vector<1x8x8xbf16>
    %62 = vector.extract_strided_slice %30 {offsets = [0, 0, 40], sizes = [1, 8, 8], strides = [1, 1, 1]} : vector<1x8x96xf32> to vector<1x8x8xf32>
    %63 = arith.truncf %62 : vector<1x8x8xf32> to vector<1x8x8xbf16>
    %64 = vector.extract_strided_slice %30 {offsets = [0, 0, 72], sizes = [1, 8, 8], strides = [1, 1, 1]} : vector<1x8x96xf32> to vector<1x8x8xf32>
    %65 = arith.truncf %64 : vector<1x8x8xf32> to vector<1x8x8xbf16>
    "tpu.trace_start"() <{level = 10 : i32, message = "bqd,bkd->bqk"}> : () -> ()
    %cst_27 = arith.constant dense<0.000000e+00> : vector<1x8x8xf32>
    %66 = tpu.matmul %61, %63, %cst_27 {dimension_numbers = #tpu.dot_dimension_numbers<[2], [2], [1], [1], [0, 0, 0, 1, 1, 1], [0], [0]>} : vector<1x8x8xbf16>, vector<1x8x8xbf16>, vector<1x8x8xf32> -> vector<1x8x8xf32>
    "tpu.trace_stop"() : () -> ()
    %67 = arith.addf %66, %32 : vector<1x8x8xf32>
    %cst_28 = arith.constant dense<0xFF800000> : vector<1x8xf32>
    %68 = vector.multi_reduction <maximumf>, %67, %cst_28 [2] : vector<1x8x8xf32> to vector<1x8xf32>
    %69 = vector.shape_cast %68 : vector<1x8xf32> to vector<1x8x1xf32>
    %70 = vector.broadcast %69 : vector<1x8x1xf32> to vector<1x8x8xf32>
    %71 = arith.subf %67, %70 : vector<1x8x8xf32>
    %72 = math.exp %71 : vector<1x8x8xf32>
    %cst_29 = arith.constant dense<0.000000e+00> : vector<1x8xf32>
    %73 = vector.multi_reduction <add>, %72, %cst_29 [2] : vector<1x8x8xf32> to vector<1x8xf32>
    %74 = vector.shape_cast %73 : vector<1x8xf32> to vector<1x8x1xf32>
    %75 = tpu.reciprocal %74 {approx = true} : vector<1x8x1xf32> -> vector<1x8x1xf32>
    %76 = vector.broadcast %75 : vector<1x8x1xf32> to vector<1x8x8xf32>
    %77 = arith.mulf %72, %76 : vector<1x8x8xf32>
    %78 = arith.truncf %77 : vector<1x8x8xf32> to vector<1x8x8xbf16>
    "tpu.trace_start"() <{level = 10 : i32, message = "bqk,bkd->bqd"}> : () -> ()
    %cst_30 = arith.constant dense<0.000000e+00> : vector<1x8x8xf32>
    %79 = tpu.matmul %78, %65, %cst_30 {dimension_numbers = #tpu.dot_dimension_numbers<[2], [1], [1], [2], [0, 0, 0, 1, 1, 2], [0], [0]>} : vector<1x8x8xbf16>, vector<1x8x8xbf16>, vector<1x8x8xf32> -> vector<1x8x8xf32>
    "tpu.trace_stop"() : () -> ()
    %80 = vector.shape_cast %79 : vector<1x8x8xf32> to vector<8x8xf32>
    %81 = arith.truncf %80 : vector<8x8xf32> to vector<8x8xbf16>
    %c1 = arith.constant 1 : index
    %c0_31 = arith.constant 0 : index
    %c0_32 = arith.constant 0 : index
    %82 = vector.load %arg7[%c1, %c0_31, %c0_32] : memref<4x8x32xbf16, #tpu.memory_space<vmem>>, vector<1x8x32xbf16>
    %83 = vector.shape_cast %82 : vector<1x8x32xbf16> to vector<8x32xbf16>
    %cst_33 = arith.constant dense<0.000000e+00> : vector<8x32xf32>
    %84 = tpu.matmul %81, %83, %cst_33 {dimension_numbers = #tpu.dot_dimension_numbers<[1], [0], [0], [1], [0, 0, 1, 1], [], []>} : vector<8x8xbf16>, vector<8x32xbf16>, vector<8x32xf32> -> vector<8x32xf32>
    %85 = arith.addf %59, %84 : vector<8x32xf32>
    %86 = vector.extract_strided_slice %30 {offsets = [0, 0, 16], sizes = [1, 8, 8], strides = [1, 1, 1]} : vector<1x8x96xf32> to vector<1x8x8xf32>
    %87 = arith.truncf %86 : vector<1x8x8xf32> to vector<1x8x8xbf16>
    %88 = vector.extract_strided_slice %30 {offsets = [0, 0, 48], sizes = [1, 8, 8], strides = [1, 1, 1]} : vector<1x8x96xf32> to vector<1x8x8xf32>
    %89 = arith.truncf %88 : vector<1x8x8xf32> to vector<1x8x8xbf16>
    %90 = vector.extract_strided_slice %30 {offsets = [0, 0, 80], sizes = [1, 8, 8], strides = [1, 1, 1]} : vector<1x8x96xf32> to vector<1x8x8xf32>
    %91 = arith.truncf %90 : vector<1x8x8xf32> to vector<1x8x8xbf16>
    "tpu.trace_start"() <{level = 10 : i32, message = "bqd,bkd->bqk"}> : () -> ()
    %cst_34 = arith.constant dense<0.000000e+00> : vector<1x8x8xf32>
    %92 = tpu.matmul %87, %89, %cst_34 {dimension_numbers = #tpu.dot_dimension_numbers<[2], [2], [1], [1], [0, 0, 0, 1, 1, 1], [0], [0]>} : vector<1x8x8xbf16>, vector<1x8x8xbf16>, vector<1x8x8xf32> -> vector<1x8x8xf32>
    "tpu.trace_stop"() : () -> ()
    %93 = arith.addf %92, %32 : vector<1x8x8xf32>
    %cst_35 = arith.constant dense<0xFF800000> : vector<1x8xf32>
    %94 = vector.multi_reduction <maximumf>, %93, %cst_35 [2] : vector<1x8x8xf32> to vector<1x8xf32>
    %95 = vector.shape_cast %94 : vector<1x8xf32> to vector<1x8x1xf32>
    %96 = vector.broadcast %95 : vector<1x8x1xf32> to vector<1x8x8xf32>
    %97 = arith.subf %93, %96 : vector<1x8x8xf32>
    %98 = math.exp %97 : vector<1x8x8xf32>
    %cst_36 = arith.constant dense<0.000000e+00> : vector<1x8xf32>
    %99 = vector.multi_reduction <add>, %98, %cst_36 [2] : vector<1x8x8xf32> to vector<1x8xf32>
    %100 = vector.shape_cast %99 : vector<1x8xf32> to vector<1x8x1xf32>
    %101 = tpu.reciprocal %100 {approx = true} : vector<1x8x1xf32> -> vector<1x8x1xf32>
    %102 = vector.broadcast %101 : vector<1x8x1xf32> to vector<1x8x8xf32>
    %103 = arith.mulf %98, %102 : vector<1x8x8xf32>
    %104 = arith.truncf %103 : vector<1x8x8xf32> to vector<1x8x8xbf16>
    "tpu.trace_start"() <{level = 10 : i32, message = "bqk,bkd->bqd"}> : () -> ()
    %cst_37 = arith.constant dense<0.000000e+00> : vector<1x8x8xf32>
    %105 = tpu.matmul %104, %91, %cst_37 {dimension_numbers = #tpu.dot_dimension_numbers<[2], [1], [1], [2], [0, 0, 0, 1, 1, 2], [0], [0]>} : vector<1x8x8xbf16>, vector<1x8x8xbf16>, vector<1x8x8xf32> -> vector<1x8x8xf32>
    "tpu.trace_stop"() : () -> ()
    %106 = vector.shape_cast %105 : vector<1x8x8xf32> to vector<8x8xf32>
    %107 = arith.truncf %106 : vector<8x8xf32> to vector<8x8xbf16>
    %c2 = arith.constant 2 : index
    %c0_38 = arith.constant 0 : index
    %c0_39 = arith.constant 0 : index
    %108 = vector.load %arg7[%c2, %c0_38, %c0_39] : memref<4x8x32xbf16, #tpu.memory_space<vmem>>, vector<1x8x32xbf16>
    %109 = vector.shape_cast %108 : vector<1x8x32xbf16> to vector<8x32xbf16>
    %cst_40 = arith.constant dense<0.000000e+00> : vector<8x32xf32>
    %110 = tpu.matmul %107, %109, %cst_40 {dimension_numbers = #tpu.dot_dimension_numbers<[1], [0], [0], [1], [0, 0, 1, 1], [], []>} : vector<8x8xbf16>, vector<8x32xbf16>, vector<8x32xf32> -> vector<8x32xf32>
    %111 = arith.addf %85, %110 : vector<8x32xf32>
    %112 = vector.extract_strided_slice %30 {offsets = [0, 0, 24], sizes = [1, 8, 8], strides = [1, 1, 1]} : vector<1x8x96xf32> to vector<1x8x8xf32>
    %113 = arith.truncf %112 : vector<1x8x8xf32> to vector<1x8x8xbf16>
    %114 = vector.extract_strided_slice %30 {offsets = [0, 0, 56], sizes = [1, 8, 8], strides = [1, 1, 1]} : vector<1x8x96xf32> to vector<1x8x8xf32>
    %115 = arith.truncf %114 : vector<1x8x8xf32> to vector<1x8x8xbf16>
    %116 = vector.extract_strided_slice %30 {offsets = [0, 0, 88], sizes = [1, 8, 8], strides = [1, 1, 1]} : vector<1x8x96xf32> to vector<1x8x8xf32>
    %117 = arith.truncf %116 : vector<1x8x8xf32> to vector<1x8x8xbf16>
    "tpu.trace_start"() <{level = 10 : i32, message = "bqd,bkd->bqk"}> : () -> ()
    %cst_41 = arith.constant dense<0.000000e+00> : vector<1x8x8xf32>
    %118 = tpu.matmul %113, %115, %cst_41 {dimension_numbers = #tpu.dot_dimension_numbers<[2], [2], [1], [1], [0, 0, 0, 1, 1, 1], [0], [0]>} : vector<1x8x8xbf16>, vector<1x8x8xbf16>, vector<1x8x8xf32> -> vector<1x8x8xf32>
    "tpu.trace_stop"() : () -> ()
    %119 = arith.addf %118, %32 : vector<1x8x8xf32>
    %cst_42 = arith.constant dense<0xFF800000> : vector<1x8xf32>
    %120 = vector.multi_reduction <maximumf>, %119, %cst_42 [2] : vector<1x8x8xf32> to vector<1x8xf32>
    %121 = vector.shape_cast %120 : vector<1x8xf32> to vector<1x8x1xf32>
    %122 = vector.broadcast %121 : vector<1x8x1xf32> to vector<1x8x8xf32>
    %123 = arith.subf %119, %122 : vector<1x8x8xf32>
    %124 = math.exp %123 : vector<1x8x8xf32>
    %cst_43 = arith.constant dense<0.000000e+00> : vector<1x8xf32>
    %125 = vector.multi_reduction <add>, %124, %cst_43 [2] : vector<1x8x8xf32> to vector<1x8xf32>
    %126 = vector.shape_cast %125 : vector<1x8xf32> to vector<1x8x1xf32>
    %127 = tpu.reciprocal %126 {approx = true} : vector<1x8x1xf32> -> vector<1x8x1xf32>
    %128 = vector.broadcast %127 : vector<1x8x1xf32> to vector<1x8x8xf32>
    %129 = arith.mulf %124, %128 : vector<1x8x8xf32>
    %130 = arith.truncf %129 : vector<1x8x8xf32> to vector<1x8x8xbf16>
    "tpu.trace_start"() <{level = 10 : i32, message = "bqk,bkd->bqd"}> : () -> ()
    %cst_44 = arith.constant dense<0.000000e+00> : vector<1x8x8xf32>
    %131 = tpu.matmul %130, %117, %cst_44 {dimension_numbers = #tpu.dot_dimension_numbers<[2], [1], [1], [2], [0, 0, 0, 1, 1, 2], [0], [0]>} : vector<1x8x8xbf16>, vector<1x8x8xbf16>, vector<1x8x8xf32> -> vector<1x8x8xf32>
    "tpu.trace_stop"() : () -> ()
    %132 = vector.shape_cast %131 : vector<1x8x8xf32> to vector<8x8xf32>
    %133 = arith.truncf %132 : vector<8x8xf32> to vector<8x8xbf16>
    %c3 = arith.constant 3 : index
    %c0_45 = arith.constant 0 : index
    %c0_46 = arith.constant 0 : index
    %134 = vector.load %arg7[%c3, %c0_45, %c0_46] : memref<4x8x32xbf16, #tpu.memory_space<vmem>>, vector<1x8x32xbf16>
    %135 = vector.shape_cast %134 : vector<1x8x32xbf16> to vector<8x32xbf16>
    %cst_47 = arith.constant dense<0.000000e+00> : vector<8x32xf32>
    %136 = tpu.matmul %133, %135, %cst_47 {dimension_numbers = #tpu.dot_dimension_numbers<[1], [0], [0], [1], [0, 0, 1, 1], [], []>} : vector<8x8xbf16>, vector<8x32xbf16>, vector<8x32xf32> -> vector<8x32xf32>
    %137 = arith.addf %111, %136 : vector<8x32xf32>
    %138 = arith.addf %1, %137 : vector<8x32xf32>
    %c0_48 = arith.constant 0 : index
    %c0_49 = arith.constant 0 : index
    %139 = vector.load %arg8[%c0_48, %c0_49] : memref<1x32xf32, #tpu.memory_space<vmem>>, vector<1x32xf32>
    %140 = vector.broadcast %139 : vector<1x32xf32> to vector<8x32xf32>
    %141 = arith.addf %138, %140 : vector<8x32xf32>
    %c0_50 = arith.constant 0 : index
    %c0_51 = arith.constant 0 : index
    %142 = vector.load %arg9[%c0_50, %c0_51] : memref<1x32xf32, #tpu.memory_space<vmem>>, vector<1x32xf32>
    %c0_52 = arith.constant 0 : index
    %c0_53 = arith.constant 0 : index
    %143 = vector.load %arg10[%c0_52, %c0_53] : memref<1x32xf32, #tpu.memory_space<vmem>>, vector<1x32xf32>
    %cst_54 = arith.constant dense<0.000000e+00> : vector<8xf32>
    %144 = vector.multi_reduction <add>, %141, %cst_54 [1] : vector<8x32xf32> to vector<8xf32>
    %145 = vector.shape_cast %144 : vector<8xf32> to vector<8x1xf32>
    %cst_55 = arith.constant 3.200000e+01 : f32
    %146 = vector.broadcast %cst_55 : f32 to vector<8x1xf32>
    %147 = arith.divf %145, %146 : vector<8x1xf32>
    %148 = vector.broadcast %147 : vector<8x1xf32> to vector<8x32xf32>
    %149 = arith.subf %141, %148 : vector<8x32xf32>
    %150 = arith.mulf %149, %149 : vector<8x32xf32>
    %cst_56 = arith.constant dense<0.000000e+00> : vector<8xf32>
    %151 = vector.multi_reduction <add>, %150, %cst_56 [1] : vector<8x32xf32> to vector<8xf32>
    %152 = vector.shape_cast %151 : vector<8xf32> to vector<8x1xf32>
    %cst_57 = arith.constant 0.0322580636 : f32
    %153 = vector.broadcast %cst_57 : f32 to vector<8x1xf32>
    %154 = arith.mulf %152, %153 : vector<8x1xf32>
    %155 = math.sqrt %154 : vector<8x1xf32>
    %cst_58 = arith.constant 9.99999997E-7 : f32
    %156 = vector.broadcast %cst_58 : f32 to vector<8x1xf32>
    %157 = arith.addf %155, %156 : vector<8x1xf32>
    %158 = vector.broadcast %157 : vector<8x1xf32> to vector<8x32xf32>
    %159 = arith.divf %149, %158 : vector<8x32xf32>
    %160 = vector.broadcast %142 : vector<1x32xf32> to vector<8x32xf32>
    %161 = arith.mulf %160, %159 : vector<8x32xf32>
    %162 = vector.broadcast %143 : vector<1x32xf32> to vector<8x32xf32>
    %163 = arith.addf %161, %162 : vector<8x32xf32>
    %164 = arith.truncf %163 : vector<8x32xf32> to vector<8x32xbf16>
    %c0_59 = arith.constant 0 : index
    %c0_60 = arith.constant 0 : index
    %165 = vector.load %arg11[%c0_59, %c0_60] : memref<32x2048xbf16, #tpu.memory_space<vmem>>, vector<32x2048xbf16>
    %cst_61 = arith.constant dense<0.000000e+00> : vector<8x2048xf32>
    %166 = tpu.matmul %164, %165, %cst_61 {dimension_numbers = #tpu.dot_dimension_numbers<[1], [0], [0], [1], [0, 0, 1, 1], [], []>} : vector<8x32xbf16>, vector<32x2048xbf16>, vector<8x2048xf32> -> vector<8x2048xf32>
    %c0_62 = arith.constant 0 : index
    %c0_63 = arith.constant 0 : index
    %167 = vector.load %arg12[%c0_62, %c0_63] : memref<1x2048xf32, #tpu.memory_space<vmem>>, vector<1x2048xf32>
    %168 = vector.broadcast %167 : vector<1x2048xf32> to vector<8x2048xf32>
    %169 = arith.addf %166, %168 : vector<8x2048xf32>
    %cst_64 = arith.constant 0.000000e+00 : f32
    %170 = vector.broadcast %cst_64 : f32 to vector<8x2048xf32>
    %171 = arith.maximumf %169, %170 : vector<8x2048xf32>
    %172 = arith.truncf %171 : vector<8x2048xf32> to vector<8x2048xbf16>
    %c0_65 = arith.constant 0 : index
    %c0_66 = arith.constant 0 : index
    %173 = vector.load %arg13[%c0_65, %c0_66] : memref<2048x32xbf16, #tpu.memory_space<vmem>>, vector<2048x32xbf16>
    %cst_67 = arith.constant dense<0.000000e+00> : vector<8x32xf32>
    %174 = tpu.matmul %172, %173, %cst_67 {dimension_numbers = #tpu.dot_dimension_numbers<[1], [0], [0], [1], [0, 0, 1, 1], [], []>} : vector<8x2048xbf16>, vector<2048x32xbf16>, vector<8x32xf32> -> vector<8x32xf32>
    %c0_68 = arith.constant 0 : index
    %c0_69 = arith.constant 0 : index
    %175 = vector.load %arg14[%c0_68, %c0_69] : memref<1x32xf32, #tpu.memory_space<vmem>>, vector<1x32xf32>
    %176 = vector.broadcast %175 : vector<1x32xf32> to vector<8x32xf32>
    %177 = arith.addf %174, %176 : vector<8x32xf32>
    %178 = arith.addf %141, %177 : vector<8x32xf32>
    %179 = vector.shape_cast %178 : vector<8x32xf32> to vector<1x8x32xf32>
    %c0_70 = arith.constant 0 : index
    %c0_71 = arith.constant 0 : index
    %c0_72 = arith.constant 0 : index
    %180 = vector.load %arg15[%c0_70, %c0_71, %c0_72] : memref<1x8x32xf32, #tpu.memory_space<vmem>>, vector<1x8x32xf32>
    tpu.vector_store %arg15[%c0_70, %c0_71, %c0_72], %179 {strides = array<i32>} : memref<1x8x32xf32, #tpu.memory_space<vmem>>, vector<1x8x32xf32>,
    return
  }
  func.func @transform_0(%arg0: i32) -> (i32, i32, i32) {
    %c0_i32 = arith.constant 0 : i32
    %c0_i32_0 = arith.constant 0 : i32
    %c0_i32_1 = arith.constant 0 : i32
    return %arg0, %c0_i32, %c0_i32_0 : i32, i32, i32
  }
  func.func @transform_1(%arg0: i32) -> (i32, i32, i32) {
    %c0_i32 = arith.constant 0 : i32
    %c0_i32_0 = arith.constant 0 : i32
    %c0_i32_1 = arith.constant 0 : i32
    return %arg0, %c0_i32, %c0_i32_0 : i32, i32, i32
  }
  func.func @transform_2(%arg0: i32) -> (i32, i32) {
    %c0_i32 = arith.constant 0 : i32
    %c0_i32_0 = arith.constant 0 : i32
    %c0_i32_1 = arith.constant 0 : i32
    return %c0_i32, %c0_i32_0 : i32, i32
  }
  func.func @transform_3(%arg0: i32) -> (i32, i32) {
    %c0_i32 = arith.constant 0 : i32
    %c0_i32_0 = arith.constant 0 : i32
    %c0_i32_1 = arith.constant 0 : i32
    return %c0_i32, %c0_i32_0 : i32, i32
  }
  func.func @transform_4(%arg0: i32) -> (i32, i32) {
    %c0_i32 = arith.constant 0 : i32
    %c0_i32_0 = arith.constant 0 : i32
    %c0_i32_1 = arith.constant 0 : i32
    return %c0_i32, %c0_i32_0 : i32, i32
  }
  func.func @transform_5(%arg0: i32) -> (i32, i32) {
    %c0_i32 = arith.constant 0 : i32
    %c0_i32_0 = arith.constant 0 : i32
    %c0_i32_1 = arith.constant 0 : i32
    return %c0_i32, %c0_i32_0 : i32, i32
  }
  func.func @transform_6(%arg0: i32) -> (i32, i32, i32) {
    %c0_i32 = arith.constant 0 : i32
    %c0_i32_0 = arith.constant 0 : i32
    %c0_i32_1 = arith.constant 0 : i32
    %c0_i32_2 = arith.constant 0 : i32
    return %c0_i32, %c0_i32_0, %c0_i32_1 : i32, i32, i32
  }
  func.func @transform_7(%arg0: i32) -> (i32, i32) {
    %c0_i32 = arith.constant 0 : i32
    %c0_i32_0 = arith.constant 0 : i32
    %c0_i32_1 = arith.constant 0 : i32
    return %c0_i32, %c0_i32_0 : i32, i32
  }
  func.func @transform_8(%arg0: i32) -> (i32, i32) {
    %c0_i32 = arith.constant 0 : i32
    %c0_i32_0 = arith.constant 0 : i32
    %c0_i32_1 = arith.constant 0 : i32
    return %c0_i32, %c0_i32_0 : i32, i32
  }
  func.func @transform_9(%arg0: i32) -> (i32, i32) {
    %c0_i32 = arith.constant 0 : i32
    %c0_i32_0 = arith.constant 0 : i32
    %c0_i32_1 = arith.constant 0 : i32
    return %c0_i32, %c0_i32_0 : i32, i32
  }
  func.func @transform_10(%arg0: i32) -> (i32, i32) {
    %c0_i32 = arith.constant 0 : i32
    %c0_i32_0 = arith.constant 0 : i32
    %c0_i32_1 = arith.constant 0 : i32
    return %c0_i32, %c0_i32_0 : i32, i32
  }
  func.func @transform_11(%arg0: i32) -> (i32, i32) {
    %c0_i32 = arith.constant 0 : i32
    %c0_i32_0 = arith.constant 0 : i32
    %c0_i32_1 = arith.constant 0 : i32
    return %c0_i32, %c0_i32_0 : i32, i32
  }
  func.func @transform_12(%arg0: i32) -> (i32, i32) {
    %c0_i32 = arith.constant 0 : i32
    %c0_i32_0 = arith.constant 0 : i32
    %c0_i32_1 = arith.constant 0 : i32
    return %c0_i32, %c0_i32_0 : i32, i32
  }
  func.func @transform_13(%arg0: i32) -> (i32, i32) {
    %c0_i32 = arith.constant 0 : i32
    %c0_i32_0 = arith.constant 0 : i32
    %c0_i32_1 = arith.constant 0 : i32
    return %c0_i32, %c0_i32_0 : i32, i32
  }
  func.func @transform_14(%arg0: i32) -> (i32, i32, i32) {
    %c0_i32 = arith.constant 0 : i32
    %c0_i32_0 = arith.constant 0 : i32
    %c0_i32_1 = arith.constant 0 : i32
    return %arg0, %c0_i32, %c0_i32_0 : i32, i32, i32
  }
}

</mosaic_0001>

<bundles_post_ra>
// kernel: tpu_custom_call.1
= control target key start
LH: loop header
LB: loop body
LE: loop exit
PB: predicated region body
PF: predicated region fallthrough
CT: control target
= control target key end

     0   :  { %s5038_s0 = inlined_call_operand.vmem [shape: f32[2,8,32], index: 0, kind: input, shape index: {}]   ;;  %s5039_s1 = inlined_call_operand.vmem [shape: bf16[2,8,8], index: 1, kind: input, shape index: {}]   ;;  %s5040_s2 = inlined_call_operand.vmem [shape: f32[1,32], index: 2, kind: input, shape index: {}]   ;;  %s5041_s3 = inlined_call_operand.vmem [shape: f32[1,32], index: 3, kind: input, shape index: {}]   ;;  %s5042_s4 = inlined_call_operand.vmem [shape: bf16[32,96], index: 4, kind: input, shape index: {}]   ;;  %s5043_s5 = inlined_call_operand.vmem [shape: f32[1,96], index: 5, kind: input, shape index: {}]   ;;  %s5044_s6 = inlined_call_operand.vmem [shape: bf16[4,8,32], index: 6, kind: input, shape index: {}]   ;;  %s5045_s7 = inlined_call_operand.vmem [shape: f32[1,32], index: 7, kind: input, shape index: {}]   ;;  %s5046_s8 = inlined_call_operand.vmem [shape: f32[1,32], index: 8, kind: input, shape index: {}]   ;;  %s5047_s9 = inlined_call_operand.vmem [shape: f32[1,32], index: 9, kind: input, shape index: {}]   ;;  %s5048_s10 = inlined_call_operand.vmem [shape: bf16[32,2048], index: 10, kind: input, shape index: {}]   ;;  %s5049_s11 = inlined_call_operand.vmem [shape: f32[1,2048], index: 11, kind: input, shape index: {}]   ;;  %s5050_s12 = inlined_call_operand.vmem [shape: bf16[2048,32], index: 12, kind: input, shape index: {}]   ;;  %s5051_s13 = inlined_call_operand.vmem [shape: f32[1,32], index: 13, kind: input, shape index: {}]   ;;  %s5052_s14 = inlined_call_operand.hbm [shape: f32[2,8,32], index: 14, kind: output, shape index: {}]  }
   0x1   :  { %5053 = sst [smem:[#allocation5_spill]] %s5038_s0 }
   0x2   :  { %5054 = sst [smem:[#allocation6_spill]] %s5039_s1 }
   0x3   :  { %5055 = sst [smem:[#allocation7_spill]] %s5040_s2 }
   0x4   :  { %5056 = sst [smem:[#allocation8_spill]] %s5041_s3 }
   0x5   :  { %5057 = sst [smem:[#allocation9_spill]] %s5042_s4 }
   0x6   :  { %19 = vsyncpa [#allocation3], 0 }
   0x7   :  { %21 = vsyncpa [#allocation3 + $0x1], 0  ;;  %s4197_s29 = smov 0   ;;  %s4199_s30 = smov 0  }
   0x8   :  { %s4201_s15 = smov 0   ;;  %s4203_s16 = smov 0  }
   0x9 LB: > { %s4218_s17 = sadd.s32 4294967295, %s4105_s16   ;;  %s3351_s18 = sadd.s32 4294967294, %s4105_s16   ;;  %s4105_s16 = sphi %s4203_s16, %s5068_s16   ;;  %s4101_s15 = sphi %s4201_s15, %s5067_s15   ;;  %s4097_s30 = sphi %s4199_s30, %s5066_s30   ;;  %s4093_s29 = sphi %s4197_s29, %s5065_s29  }
   0xa   : > { %s4222_s19 = sadd.s32 1, %s4105_s16   ;;  %s338_s20 = sadd.s32 1, %s4101_s15 }
   0xb   : > { %s335_s21 = ssub.s32 %s4105_s16, %s4222_s19  ;;  %p348_p0 = scmp.ne.s32.totalorder %s4101_s15, %s4097_s30 }
   0xc   : > { %p336_p1 = scmp.eq.s32.totalorder %s335_s21, 0  ;;  %p349_p2 = scmp.eq.s32.totalorder %s4218_s17, 1 }
   0xd   : > { %p354_p3 = scmp.ne.s32.totalorder %s4097_s30, %s4093_s29  ;;  %p355_p4 = scmp.eq.s32.totalorder %s3351_s18, 1 }
   0xe   : > { %s4233_s22 = scalar_select %p336_p1, %s4101_s15, %s338_s20  }
   0xf   : > { %p4235_p5 = por %p349_p2, %p348_p0  ;;  %p4239_p6 = por %p355_p4, %p354_p3 }
  0x10   : > { %p3354_p7 = scmp.ge.s32.totalorder %s4105_s16, 1  ;;  %p423_p8 = scmp.lt.s32.totalorder %s4105_s16, 3 }
  0x12   : > { %p424_p9 = pnand %p3354_p7, %p423_p8 }
  0x13   : > { %p472_p10 = scmp.lt.s32.totalorder (!%p424_p9), %s4218_s17, 1  ;;  %s5060_s0 = sld [smem:[#allocation5_spill]] (!%p424_p9) }
  0x14   : > { %427 = sbr.rel (%p424_p9) target bundleno = 3660 (0xe4c), region = 76  ;;  %s5061_s4 = sld [smem:[#allocation9_spill]] (!%p424_p9) }
  0x15   : > { %s5062_s2 = sld [smem:[#allocation7_spill]] (!%p424_p9)  ;;  %s4109_s28 = smov (!%p424_p9), 120  }
  0x16   : > { %s5063_s3 = sld [smem:[#allocation8_spill]] (!%p424_p9)  ;;  %s4111_s20 = smov (!%p424_p9), 88  }
  0x17   : > { %s5064_s1 = sld [smem:[#allocation6_spill]] (!%p424_p9) }
  0x19   : > { %s4247_s25 = scalar_select %p472_p10, %s4218_s17, 1  ;;  %vm484_vm0 = vcmask 261120   ;;  %v4107_v8 = vmov 0.0   ;;  %vm4108_vm1 = vmmov 0   ;;  %v3360_v25 = vld [vmem:[%s5043_s5] ss:$0 sm:$0xff] }
  0x1a   : > { %v3891_v7 = vld [vmem:[%s5061_s4 + $0x8] sm:$0xff]   ;;  %3758 = vmatprep.subr.bf16.mxu0 %v4107_v8  ;;  %3762 = vmatprep.mubr.msk.bf16.mxu0 %vm4108_vm1, %v4107_v8  ;;  %v3892_v9 = vld [vmem:[%s5061_s4] sm:$0xff]   ;;  %vm593_vm4 = vcmask 64512   ;;  %vm657_vm5 = vcmask 1043456  }
  0x1b   : > { %s3356_s26 = sshll.u32 %s4247_s25, 3  ;;  %3759 = vmatpush3.bf16.msra.mxu0 %v3891_v7  ;;  %3766 = vmatprep.subr.bf16.mxu1 %v4107_v8  ;;  %v3358_v19 = vld [vmem:[%s5062_s2] ss:$0 sm:$0xff]  ;;  %s3357_s21 = sshll.u32 %s4247_s25, 2 }
  0x1c   : > { %s475_s18 = scalar_lea.vmem %s5060_s0, %s3356_s26  ;;  %3760 = vmatprep.subr.bf16.mxu0 %v4107_v8  ;;  %3768 = vmatprep.mubr.msk.bf16.mxu1 %vm4108_vm1, %v4107_v8  ;;  %v3359_v21 = vld [vmem:[%s5063_s3] ss:$0 sm:$0xff]  ;;  %s4112_s25 = smov 56  }
  0x1d   : > { %v4253_v0 = vld [vmem:[%s475_s18] sm:$0xff]  ;;  %s4110_s18 = smov 96   ;;  %s469_s26 = sand.u32 1, %s4097_s30  }
  0x1e   : > { %v485_v1 = vsel %vm484_vm0, %v4253_v0, 0.0  ;;  %s3355_s27 = sshll.u32 %s469_s26, 3 }
  0x1f   : > { %486 = vadd.xlane.f32.xlu0 %v485_v1  ;;  %3761 = vmatpush3.bf16.msra.mxu0 %v3892_v9 }
  0x20   : > { %3772 = vmatprep.subr.bf16.mxu0 %v4107_v8 }
  0xa8   : > { %v487_v2 = vpop.xlane.xlu0 %486 }
  0xa9   : > { %v489_v3 = vmul.f32 0.03125, %v487_v2 }
  0xab   : > { %v490_v4 = vsub.f32 %v4253_v0, %v489_v3 }
  0xad   : > { %v491_v5 = vmul.f32 %v490_v4, %v490_v4 }
  0xaf   : > { %v492_v6 = vsel %vm484_vm0, %v491_v5, 0.0 }
  0xb0   : > { %493 = vadd.xlane.f32.xlu0 %v492_v6 }
 0x139   : > { %v494_v10 = vpop.xlane.xlu0 %493 }
 0x13a   : > { %v495_v11 = vmul.f32 0.032258064, %v494_v10 }
 0x13c   : > { %4021 = vrsqrt.f32 %v495_v11  ;;  %vm498_vm2 = vcmp.eq.f32.partialorder %v495_v11, inf  ;;  %v501_v14 = vand.u32 2147483648, %v495_v11  ;;  %vm500_vm3 = vcmp.eq.f32.partialorder %v495_v11, 0.0 }
 0x149   : > { %v4022_v12 = vpop.eup %4021 }
 0x14a   : > { %v497_v13 = vmul.f32 %v4022_v12, %v495_v11 }
 0x14c   : > { %v499_v15 = vsel %vm498_vm2, %v495_v11, %v497_v13  ;;  %v702_v11 = vld [vmem:[%s5044_s6] sm:$0xf]  ;;  %v3368_v13 = vld [vmem:[%s5044_s6 + $0x4] sm:$0xf] }
 0x14d   : > { %v502_v16 = vsel %vm500_vm3, %v501_v14, %v499_v15  ;;  %v866_v12 = vsel %vm657_vm5, %v702_v11, 0  ;;  %v820_v14 = vsel %vm657_vm5, %v3368_v13, 0 }
 0x14e   : > { %v503_v17 = vadd.f32 1e-06, %v502_v16 }
 0x150   : > { %4023 = vrcp.f32 %v503_v17 }
 0x15d   : > { %v4024_v18 = vpop.eup %4023 }
 0x15e   : > { %v505_v20 = vmul.f32 %v4024_v18, %v490_v4 }
 0x160   : > { %v512_v22 = vmul.f32 %v3358_v19, %v505_v20 }
 0x162   : > { %v519_v23 = vadd.f32 %v3359_v21, %v512_v22 }
 0x164   : > { %v520_v24 = vpack.c.bf16 %v519_v23, %v519_v23 }
 0x166   : > { %3763 = vmatmul.mubr.msk.bf16.vlgmr.msra.gmra.mxu0 %vm484_vm0, %v520_v24 }
 0x167   : > { %3774 = vmatprep.mubr.msk.bf16.mxu0 %vm4108_vm1, %v4107_v8 }
 0x226   : > { %v581_v26 = vpop.f32.mrf.mxu0 }
 0x227   : > { %v582_v27 = vadd.f32 %v3360_v25, %v581_v26 }
 0x228   : > { %v3764_v28 = vpop.f32.mrf.mxu0 }
 0x229   : > { %v4285_v29 = vpack.c.bf16 %v582_v27, %v582_v27 }
 0x22a   : > { %v584_v30 = vpop.f32.mrf.mxu0 }
 0x22b   : > { %703 = vrot.lane.b32.xlu0 %v4285_v29, %s4109_s28  ;;  %591 = vrot.lane.b32.xlu1 %v4285_v29, %s4110_s18  ;;  %s479_s28 = scalar_lea.vmem %s5064_s1, %s3357_s21  ;;  %s4113_s18 = smov 64  }
 0x22c   : > { %v3765_v31 = vpop.f32.mrf.mxu0  ;;  %v587_v37 = vld [vmem:[%s479_s28] sm:$0xf]  ;;  %s4115_s21 = smov 112   ;;  %s4119_s28 = smov 40  }
 0x22d   : > { %v4305_v38 = vunpack.c.l.bf16 %v587_v37 }
 0x22f   : > { %705 = vrot.lane.b32.xlu1 %v4285_v29, %s4111_s20  ;;  %s4114_s20 = smov 80  }
 0x29d   : > { %v592_v32 = vpop.permute.xlu1 %591  ;;  %v704_v36 = vpop.permute.xlu0 %703 }
 0x29e   : > { %v598_v33 = vsel %vm593_vm4, %v592_v32, 0 }
 0x29f   : > { %3767 = vmatpush3.bf16.xpose.msra.mxu1 %v598_v33 }
 0x2a0   : > { %3778 = vmatprep.subr.bf16.mxu1 %v4107_v8 }
 0x2a1   : > { %v706_v34 = vpop.permute.xlu1 %705 }
 0x2a2   : > { %v711_v35 = vsel %vm593_vm4, %v706_v34, 0 }
 0x2a6   : > { %3769 = vmatmul.mubr.msk.bf16.vlgmr.msra.gmra.mxu1 %vm593_vm4, %v4285_v29 }
 0x2a7   : > { %3779 = vmatpush3.bf16.xpose.msra.mxu1 %v711_v35  ;;  %3780 = vmatprep.mubr.msk.bf16.mxu1 %vm4108_vm1, %v4107_v8 }
 0x2a8   : > { %3790 = vmatprep.subr.bf16.mxu1 %v4107_v8 }
 0x2ae   : > { %3781 = vmatmul.mubr.msk.bf16.vlgmr.msra.gmra.mxu1 %vm593_vm4, %v704_v36 }
 0x2af   : > { %3792 = vmatprep.mubr.msk.bf16.mxu1 %vm4108_vm1, %v4107_v8  ;;  %3791 = vmatpush3.bf16.msra.mxu1 %v820_v14 }
 0x2b0   : > { %3802 = vmatprep.subr.bf16.mxu1 %v4107_v8 }
 0x366   : > { %v634_v39 = vpop.f32.mrf.mxu1 }
 0x367   : > { %v635_v40 = vadd.f32 %v634_v39, %v4305_v38 }
 0x368   : > { %v3770_v41 = vpop.f32.mrf.mxu1 }
 0x369   : > { %v640_v42 = vsel %vm593_vm4, %v635_v40, -inf }
 0x36a   : > { %641 = vmax.xlane.f32.xlu1 %v640_v42  ;;  %v637_v43 = vpop.f32.mrf.mxu1 }
 0x36c   : > { %v3771_v44 = vpop.f32.mrf.mxu1 }
 0x36e   : > { %v747_v45 = vpop.f32.mrf.mxu1 }
 0x36f   : > { %v748_v46 = vadd.f32 %v747_v45, %v4305_v38 }
 0x370   : > { %v3782_v47 = vpop.f32.mrf.mxu1 }
 0x371   : > { %v753_v48 = vsel %vm593_vm4, %v748_v46, -inf }
 0x372   : > { %754 = vmax.xlane.f32.xlu0 %v753_v48  ;;  %v750_v49 = vpop.f32.mrf.mxu1 }
 0x374   : > { %v3783_v50 = vpop.f32.mrf.mxu1 }
 0x388   : > { %765 = vrot.lane.b32.xlu0 %v4285_v29, %s4112_s25  ;;  %s471_s25 = scalar_lea.vmem [#allocation2], %s3355_s27 }
 0x3f3   : > { %v642_v51 = vpop.xlane.xlu1 %641 }
 0x3f4   : > { %v643_v52 = vsub.f32 %v635_v40, %v642_v51 }
 0x3f6   : > { %v644_v53 = vmul.f32 1.442695, %v643_v52 }
 0x3f8   : > { %4025 = vpow2.f32 %v644_v53 }
 0x3fb   : > { %v755_v54 = vpop.xlane.xlu0 %754 }
 0x3fc   : > { %v756_v55 = vsub.f32 %v748_v46, %v755_v54 }
 0x3fe   : > { %v757_v56 = vmul.f32 1.442695, %v756_v55 }
 0x3ff   : > { %v766_v4 = vpop.permute.xlu0 %765 }
 0x400   : > { %4027 = vpow2.f32 %v757_v56  ;;  %v771_v6 = vsel %vm657_vm5, %v766_v4, 0 }
 0x405   : > { %v4026_v57 = vpop.eup %4025 }
 0x406   : > { %v646_v58 = vsel %vm593_vm4, %v4026_v57, 0.0 }
 0x407   : > { %647 = vadd.xlane.f32.xlu1 %v646_v58 }
 0x40d   : > { %v4028_v59 = vpop.eup %4027 }
 0x40e   : > { %v759_v60 = vsel %vm593_vm4, %v4028_v59, 0.0 }
 0x40f   : > { %760 = vadd.xlane.f32.xlu1 %v759_v60 }
 0x420   : > { %652 = vrot.lane.b32.xlu1 %v4285_v29, %s4113_s18  ;;  %s4116_s18 = smov 48  }
 0x424   : > { %910 = vrot.lane.b32.xlu1 %v4285_v29, %s4114_s20  ;;  %s4117_s20 = smov 104  }
 0x428   : > { %908 = vrot.lane.b32.xlu1 %v4285_v29, %s4115_s21  ;;  %s4118_s21 = smov 72  }
 0x490   : > { %v648_v61 = vpop.xlane.xlu1 %647 }
 0x491   : > { %4029 = vrcp.f32 %v648_v61 }
 0x498   : > { %v761_v62 = vpop.xlane.xlu1 %760 }
 0x499   : > { %4031 = vrcp.f32 %v761_v62 }
 0x49c   : > { %v653_v63 = vpop.permute.xlu1 %652 }
 0x49d   : > { %v659_v1 = vsel %vm657_vm5, %v653_v63, 0 }
 0x49e   : > { %v4030_v2 = vpop.eup %4029  ;;  %3773 = vmatpush3.bf16.msra.mxu0 %v659_v1 }
 0x49f   : > { %3784 = vmatprep.subr.bf16.mxu0 %v4107_v8  ;;  %v650_v3 = vmul.f32 %v4030_v2, %v4026_v57 }
 0x4a0   : > { %v911_v20 = vpop.permute.xlu1 %910 }
 0x4a1   : > { %v651_v5 = vpack.c.bf16 %v650_v3, %v650_v3  ;;  %v916_v24 = vsel %vm593_vm4, %v911_v20, 0 }
 0x4a3   : > { %3775 = vmatmul.mubr.msk.bf16.vlgmr.msra.gmra.mxu0 %vm593_vm4, %v651_v5 }
 0x4a4   : > { %3785 = vmatpush3.bf16.msra.mxu0 %v771_v6  ;;  %3786 = vmatprep.mubr.msk.bf16.mxu0 %vm4108_vm1, %v4107_v8  ;;  %v909_v27 = vpop.permute.xlu1 %908 }
 0x4a5   : > { %3796 = vmatprep.subr.bf16.mxu0 %v4107_v8 }
 0x4a6   : > { %v4032_v7 = vpop.eup %4031 }
 0x4a7   : > { %v763_v9 = vmul.f32 %v4032_v7, %v4028_v59  ;;  %v3373_v59 = vld [vmem:[%s5044_s6 + $0x8] sm:$0xf] }
 0x4a8   : > { %v1025_v60 = vsel %vm657_vm5, %v3373_v59, 0 }
 0x4a9   : > { %v764_v10 = vpack.c.bf16 %v763_v9, %v763_v9 }
 0x4ab   : > { %3787 = vmatmul.mubr.msk.bf16.vlgmr.msra.gmra.mxu0 %vm593_vm4, %v764_v10 }
 0x4ac   : > { %3798 = vmatprep.mubr.msk.bf16.mxu0 %vm4108_vm1, %v4107_v8  ;;  %3797 = vmatpush3.bf16.msra.mxu0 %v866_v12 }
 0x4ad   : > { %3808 = vmatprep.subr.bf16.mxu0 %v4107_v8 }
 0x563   : > { %v695_v15 = vpop.f32.mrf.mxu0 }
 0x564   : > { %v701_v16 = vpack.c.bf16 %v695_v15, %v695_v15 }
 0x565   : > { %v3776_v17 = vpop.f32.mrf.mxu0 }
 0x566   : > { %3799 = vmatmul.mubr.msk.bf16.vlgmr.msra.gmra.mxu0 %vm593_vm4, %v701_v16  ;;  %v3377_v16 = vld [vmem:[%s5044_s6 + $0xc] sm:$0xf] }
 0x567   : > { %v698_v18 = vpop.f32.mrf.mxu0  ;;  %3810 = vmatprep.mubr.msk.bf16.mxu0 %vm4108_vm1, %v4107_v8  ;;  %v1185_v17 = vsel %vm657_vm5, %v3377_v16, 0 }
 0x569   : > { %v3777_v19 = vpop.f32.mrf.mxu0 }
 0x56b   : > { %v807_v21 = vpop.f32.mrf.mxu0 }
 0x56c   : > { %v813_v22 = vpack.c.bf16 %v807_v21, %v807_v21 }
 0x56d   : > { %v3788_v23 = vpop.f32.mrf.mxu0 }
 0x56e   : > { %3793 = vmatmul.mubr.msk.bf16.vlgmr.msra.gmra.mxu1 %vm593_vm4, %v813_v22 }
 0x56f   : > { %3803 = vmatpush3.bf16.xpose.msra.mxu1 %v916_v24  ;;  %v810_v25 = vpop.f32.mrf.mxu0  ;;  %3804 = vmatprep.mubr.msk.bf16.mxu1 %vm4108_vm1, %v4107_v8 }
 0x570   : > { %3814 = vmatprep.subr.bf16.mxu1 %v4107_v8 }
 0x571   : > { %v3789_v26 = vpop.f32.mrf.mxu0 }
 0x576   : > { %3805 = vmatmul.mubr.msk.bf16.vlgmr.msra.gmra.mxu1 %vm593_vm4, %v909_v27 }
 0x577   : > { %3816 = vmatprep.mubr.msk.bf16.mxu1 %vm4108_vm1, %v4107_v8  ;;  %3815 = vmatpush3.bf16.msra.mxu1 %v1025_v60 }
 0x578   : > { %3826 = vmatprep.subr.bf16.mxu1 %v4107_v8 }
 0x626   : > { %v902_v28 = vpop.f32.mrf.mxu0 }
 0x628   : > { %v3800_v30 = vpop.f32.mrf.mxu0 }
 0x62a   : > { %v905_v31 = vpop.f32.mrf.mxu0 }
 0x62c   : > { %v3801_v32 = vpop.f32.mrf.mxu0 }
 0x62e   : > { %v856_v33 = vpop.f32.mrf.mxu1 }
 0x62f   : > { %v4348_v34 = vadd.f32 %v902_v28, %v856_v33  ;;  %v3379_v33 = vld [vmem:[%s5045_s7] ss:$0 sm:$0xff] }
 0x630   : > { %v3794_v35 = vpop.f32.mrf.mxu1 }
 0x632   : > { %v859_v36 = vpop.f32.mrf.mxu1 }
 0x634   : > { %v3795_v37 = vpop.f32.mrf.mxu1 }
 0x636   : > { %v952_v39 = vpop.f32.mrf.mxu1 }
 0x637   : > { %v953_v40 = vadd.f32 %v952_v39, %v4305_v38 }
 0x638   : > { %v3806_v41 = vpop.f32.mrf.mxu1 }
 0x639   : > { %v958_v42 = vsel %vm593_vm4, %v953_v40, -inf }
 0x63a   : > { %959 = vmax.xlane.f32.xlu1 %v958_v42  ;;  %v955_v43 = vpop.f32.mrf.mxu1 }
 0x63c   : > { %v3807_v44 = vpop.f32.mrf.mxu1 }
 0x64b   : > { %970 = vrot.lane.b32.xlu1 %v4285_v29, %s4116_s18  ;;  %s3280_s18 = sshll.u32 %s471_s25, 4  ;;  %s3281_s18 = int_to_ptr.vmem [resolvable:$true] %s3280_s18 }
 0x64f   : > { %1068 = vrot.lane.b32.xlu1 %v4285_v29, %s4117_s20  ;;  %s3267_s20 = scalar_lea.sflag [#allocation3], %s469_s26 }
 0x6c3   : > { %v960_v45 = vpop.xlane.xlu1 %959 }
 0x6c4   : > { %v961_v46 = vsub.f32 %v953_v40, %v960_v45 }
 0x6c6   : > { %v962_v47 = vmul.f32 1.442695, %v961_v46  ;;  %v1298_v46 = vld [vmem:[%s5048_s10 + $0xc0] sm:$0xff] }
 0x6c7   : > { %v971_v48 = vpop.permute.xlu1 %970 }
 0x6c8   : > { %4033 = vpow2.f32 %v962_v47  ;;  %v976_v49 = vsel %vm657_vm5, %v971_v48, 0  ;;  %v1291_v47 = vld [vmem:[%s5048_s10 + $0x88] sm:$0xff] }
 0x6c9   : > { %3809 = vmatpush3.bf16.msra.mxu0 %v976_v49  ;;  %v1299_v49 = vld [vmem:[%s5048_s10 + $0xc8] sm:$0xff] }
 0x6ca   : > { %3820 = vmatprep.subr.bf16.mxu0 %v4107_v8 }
 0x6cb   : > { %v1069_v58 = vpop.permute.xlu1 %1068 }
 0x6d5   : > { %v4034_v50 = vpop.eup %4033 }
 0x6d6   : > { %v964_v51 = vsel %vm593_vm4, %v4034_v50, 0.0 }
 0x6d7   : > { %965 = vadd.xlane.f32.xlu0 %v964_v51  ;;  %v3400_v51 = vcombine.low %v1291_v47, %v1299_v49 }
 0x6ed   : > { %1070 = vrot.lane.b32.xlu0 %v4285_v29, %s4118_s21  ;;  %s4045_s21 = scalar_lea.vmem %s3281_s18, 128 }
 0x6ee   : > { %p4046_p11 = scmp.ne.s32.totalorder %s3281_s18, %s4045_s21 }
 0x6f0   : > { %p4047_p12 = pnand %p4046_p11, %p4235_p5 }
 0x6f2   : > { %p4048_p13 = pneg %p4047_p12 }
 0x760   : > { %v966_v52 = vpop.xlane.xlu0 %965 }
 0x761   : > { %4035 = vrcp.f32 %v966_v52  ;;  %v3401_v52 = vcombine.high %v1291_v47, %v1299_v49  ;;  %v1305_v47 = vld [vmem:[%s5048_s10 + $0xf8] sm:$0xff] }
 0x764   : > { %v1071_v55 = vpop.permute.xlu0 %1070 }
 0x765   : > { %v1076_v57 = vsel %vm593_vm4, %v1071_v55, 0  ;;  %v1275_v55 = vld [vmem:[%s5048_s10 + $0x8] sm:$0xff] }
 0x76e   : > { %v4036_v53 = vpop.eup %4035 }
 0x76f   : > { %v968_v54 = vmul.f32 %v4036_v53, %v4034_v50  ;;  %v1274_v53 = vld [vmem:[%s5048_s10] sm:$0xff] }
 0x771   : > { %v969_v56 = vpack.c.bf16 %v968_v54, %v968_v54  ;;  %v1282_v54 = vld [vmem:[%s5048_s10 + $0x40] sm:$0xff] }
 0x772   : > { %v3382_v59 = vcombine.low %v1274_v53, %v1282_v54 }
 0x773   : > { %3811 = vmatmul.mubr.msk.bf16.vlgmr.msra.gmra.mxu0 %vm593_vm4, %v969_v56  ;;  %v3383_v56 = vcombine.high %v1274_v53, %v1282_v54  ;;  %v1288_v53 = vld [vmem:[%s5048_s10 + $0x70] sm:$0xff]  ;;  %v1281_v54 = vld [vmem:[%s5048_s10 + $0x38] sm:$0xff] }
 0x774   : > { %3821 = vmatpush3.bf16.xpose.msra.mxu0 %v1076_v57  ;;  %3822 = vmatprep.mubr.msk.bf16.mxu0 %vm4108_vm1, %v4107_v8  ;;  %v1283_v57 = vld [vmem:[%s5048_s10 + $0x48] sm:$0xff] }
 0x775   : > { %3832 = vmatprep.subr.bf16.mxu0 %v4107_v8  ;;  %v3385_v60 = vcombine.high %v1275_v55, %v1283_v57 }
 0x77b   : > { %3823 = vmatmul.mubr.msk.bf16.vlgmr.msra.gmra.mxu0 %vm593_vm4, %v1069_v58  ;;  %v4120_v58 = vmov 0  }
 0x77c   : > { %3834 = vmatprep.mubr.msk.bf16.mxu0 %vm4108_vm1, %v4107_v8  ;;  %3833 = vmatpush3.bf16.msra.mxu0 %v1185_v17  ;;  %v3381_v17 = vld [vmem:[%s5047_s9] ss:$0 sm:$0xff] }
 0x77d   : > { %1606 = vmatprep.subr.bf16.mxu0 %v3401_v52  ;;  %v1280_v52 = vld [vmem:[%s5048_s10 + $0x30] sm:$0xff] }
 0x833   : > { %v1012_v61 = vpop.f32.mrf.mxu0 }
 0x834   : > { %v1018_v62 = vpack.c.bf16 %v1012_v61, %v1012_v61  ;;  %v3384_v61 = vcombine.low %v1275_v55, %v1283_v57  ;;  %v1289_v55 = vld [vmem:[%s5048_s10 + $0x78] sm:$0xff] }
 0x835   : > { %v3812_v63 = vpop.f32.mrf.mxu0 }
 0x836   : > { %3817 = vmatmul.mubr.msk.bf16.vlgmr.msra.gmra.mxu1 %vm593_vm4, %v1018_v62  ;;  %v1292_v62 = vld [vmem:[%s5048_s10 + $0x90] sm:$0xff] }
 0x837   : > { %v1015_v1 = vpop.f32.mrf.mxu0  ;;  %3828 = vmatprep.mubr.msk.bf16.mxu1 %vm4108_vm1, %v4107_v8  ;;  %v1300_v63 = vld [vmem:[%s5048_s10 + $0xd0] sm:$0xff] }
 0x838   : > { %v1293_v1 = vld [vmem:[%s5048_s10 + $0x98] sm:$0xff] }
 0x839   : > { %v3813_v2 = vpop.f32.mrf.mxu0 }
 0x83a   : > { %v3403_v2 = vcombine.high %v1292_v62, %v1300_v63 }
 0x83b   : > { %v1112_v3 = vpop.f32.mrf.mxu0 }
 0x83c   : > { %v1113_v4 = vadd.f32 %v1112_v3, %v4305_v38  ;;  %v1301_v3 = vld [vmem:[%s5048_s10 + $0xd8] sm:$0xff] }
 0x83d   : > { %v3824_v5 = vpop.f32.mrf.mxu0 }
 0x83e   : > { %v1118_v6 = vsel %vm593_vm4, %v1113_v4, -inf  ;;  %v3404_v5 = vcombine.low %v1293_v1, %v1301_v3 }
 0x83f   : > { %1119 = vmax.xlane.f32.xlu1 %v1118_v6  ;;  %v1115_v7 = vpop.f32.mrf.mxu0  ;;  %v3405_v6 = vcombine.high %v1293_v1, %v1301_v3  ;;  %v3894_v1 = vld [vmem:[%s5050_s12 + $0xf8] sm:$0xff]  }
 0x840   : > { %v3896_v3 = vld [vmem:[%s5050_s12 + $0xb8] sm:$0xff]  }
 0x841   : > { %v3825_v9 = vpop.f32.mrf.mxu0 }
 0x8c8   : > { %v1120_v10 = vpop.xlane.xlu1 %1119 }
 0x8c9   : > { %v1121_v11 = vsub.f32 %v1113_v4, %v1120_v10  ;;  %v3402_v4 = vcombine.low %v1292_v62, %v1300_v63  ;;  %v3396_v62 = vcombine.low %v1281_v54, %v1289_v55  ;;  %v3893_v63 = vld [vmem:[%s5050_s12 + $0x78] sm:$0xff]  }
 0x8cb   : > { %v1122_v12 = vmul.f32 1.442695, %v1121_v11 }
 0x8cd   : > { %4037 = vpow2.f32 %v1122_v12 }
 0x8da   : > { %v4038_v13 = vpop.eup %4037 }
 0x8db   : > { %v1124_v14 = vsel %vm593_vm4, %v4038_v13, 0.0 }
 0x8dc   : > { %1125 = vadd.xlane.f32.xlu0 %v1124_v14 }
 0x8f2   : > { %1130 = vrot.lane.b32.xlu0 %v4285_v29, %s4119_s28  ;;  %s3552_s28 = sshll.u32 %s4218_s17, 7  ;;  %s4121_s17 = smov [#allocation2]  }
 0x8f3   : > { %s3278_s2 = scalar_lea.hbm %s5052_s14, %s3552_s28  ;;  %s4049_s27 = sshll.u32 %s4121_s17, 4  ;;  %s4050_s27 = int_to_ptr.vmem [resolvable:$false] %s4049_s27 }
 0x8f4   : > { %s4051_s3 = scalar_lea.vmem %s4050_s27, 256  ;;  %p4052_p0 = scmp.lt.s32.totalorder %s3281_s18, %s4050_s27 }
 0x8f5   : > { %p4053_p1 = scmp.lt.s32.totalorder %s4051_s3, %s4045_s21 }
 0x8f6   : > { %v1061_v8 = vpop.f32.mrf.mxu1 }
 0x8f7   : > { %v1067_v38 = vadd.f32 %v1061_v8, %v4348_v34  ;;  %p4054_p2 = por %p4053_p1, %p4052_p0 }
 0x8f8   : > { %v3818_v15 = vpop.f32.mrf.mxu1 }
 0x8f9   : > { %v3380_v15 = vld [vmem:[%s5046_s8] ss:$0 sm:$0xff]  ;;  %p4055_p3 = pnand %p4054_p2, %p4048_p13 }
 0x8fa   : > { %v1064_v18 = vpop.f32.mrf.mxu1 }
 0x8fc   : > { %v3819_v19 = vpop.f32.mrf.mxu1 }
 0x8fd   : > { %v1276_v19 = vld [vmem:[%s5048_s10 + $0x10] sm:$0xff] }
 0x965   : > { %v1126_v20 = vpop.xlane.xlu0 %1125 }
 0x966   : > { %4039 = vrcp.f32 %v1126_v20  ;;  %v1284_v20 = vld [vmem:[%s5048_s10 + $0x50] sm:$0xff] }
 0x969   : > { %v1131_v21 = vpop.permute.xlu0 %1130 }
 0x96a   : > { %v1136_v22 = vsel %vm657_vm5, %v1131_v21, 0  ;;  %v1277_v21 = vld [vmem:[%s5048_s10 + $0x18] sm:$0xff] }
 0x96b   : > { %3827 = vmatpush3.bf16.msra.mxu1 %v1136_v22  ;;  %v1285_v22 = vld [vmem:[%s5048_s10 + $0x58] sm:$0xff] }
 0x973   : > { %v4040_v29 = vpop.eup %4039 }
 0x974   : > { %v1128_v23 = vmul.f32 %v4040_v29, %v4038_v13 }
 0x976   : > { %v1129_v24 = vpack.c.bf16 %v1128_v23, %v1128_v23 }
 0x978   : > { %3829 = vmatmul.mubr.msk.bf16.vlgmr.msra.gmra.mxu1 %vm593_vm4, %v1129_v24  ;;  %v3387_v24 = vcombine.high %v1276_v19, %v1284_v20 }
 0x979   : > { %1585 = vmatprep.mubr.bf16.mxu1 %v4120_v58 }
 0xa38   : > { %v1172_v25 = vpop.f32.mrf.mxu1 }
 0xa39   : > { %v1178_v26 = vpack.c.bf16 %v1172_v25, %v1172_v25  ;;  %v3389_v25 = vcombine.high %v1277_v21, %v1285_v22 }
 0xa3a   : > { %v3830_v27 = vpop.f32.mrf.mxu1 }
 0xa3b   : > { %3835 = vmatmul.mubr.msk.bf16.vlgmr.msra.gmra.mxu0 %vm593_vm4, %v1178_v26  ;;  %v1294_v26 = vld [vmem:[%s5048_s10 + $0xa0] sm:$0xff] }
 0xa3c   : > { %v1175_v28 = vpop.f32.mrf.mxu1  ;;  %1607 = vmatpush1.bf16.msra.mxu0 %v3400_v51  ;;  %1626 = vmatprep.mubr.bf16.mxu0 %v4120_v58  ;;  %v1302_v27 = vld [vmem:[%s5048_s10 + $0xe0] sm:$0xff] }
 0xa3d   : > { %1608 = vmatprep.subr.bf16.mxu0 %v3385_v60  ;;  %v1295_v28 = vld [vmem:[%s5048_s10 + $0xa8] sm:$0xff]  ;;  %v3397_v60 = vcombine.high %v1281_v54, %v1289_v55 }
 0xa3e   : > { %v3831_v30 = vpop.f32.mrf.mxu1 }
 0xa3f   : > { %v1303_v30 = vld [vmem:[%s5048_s10 + $0xe8] sm:$0xff] }
 0xa40   : > { %1609 = vmatpush1.bf16.msra.mxu0 %v3384_v61  ;;  %v3394_v61 = vcombine.low %v1280_v52, %v1288_v53 }
 0xa41   : > { %1688 = vmatprep.subr.bf16.mxu0 %v3405_v6  ;;  %v3900_v6 = vld [vmem:[%s5050_s12 + $0xb0] sm:$0xff]  }
 0xafb   : > { %v1221_v31 = vpop.f32.mrf.mxu0 }
 0xafc   : > { %v1227_v32 = vadd.f32 %v1221_v31, %v1067_v38  ;;  %v3386_v31 = vcombine.low %v1276_v19, %v1284_v20  ;;  %v3914_v19 = vld [vmem:[%s5050_s12 + $0xd0] sm:$0xff]  }
 0xafd   : > { %v3836_v34 = vpop.f32.mrf.mxu0  ;;  %v3915_v20 = vld [vmem:[%s5050_s12 + $0x10] sm:$0xff]  }
 0xafe   : > { %v1228_v35 = vadd.f32 %v1227_v32, %v4253_v0  ;;  %v1290_v0 = vld [vmem:[%s5048_s10 + $0x80] sm:$0xff]  ;;  %v3388_v32 = vcombine.low %v1277_v21, %v1285_v22  ;;  %v3409_v34 = vcombine.high %v1295_v28, %v1303_v30  ;;  %v3916_v21 = vld [vmem:[%s5050_s12 + $0x90] sm:$0xff]   ;;  %v3917_v22 = vld [vmem:[%s5050_s12 + $0x48] sm:$0xff]  }
 0xaff   : > { %v1224_v36 = vpop.f32.mrf.mxu0  ;;  %v3399_v48 = vcombine.high %v1290_v0, %v1298_v46  ;;  %v3398_v50 = vcombine.low %v1290_v0, %v1298_v46  ;;  %v1304_v0 = vld [vmem:[%s5048_s10 + $0xf0] sm:$0xff]  ;;  %v1297_v46 = vld [vmem:[%s5048_s10 + $0xb8] sm:$0xff] }
 0xb00   : > { %v4390_v37 = vadd.f32 %v3379_v33, %v1228_v35  ;;  %v3407_v33 = vcombine.high %v1294_v26, %v1302_v27  ;;  %v1278_v35 = vld [vmem:[%s5048_s10 + $0x20] sm:$0xff]  ;;  %v3413_v51 = vcombine.high %v1297_v46, %v1305_v47  ;;  %v3412_v57 = vcombine.low %v1297_v46, %v1305_v47 }
 0xb01   : > { %v3837_v39 = vpop.f32.mrf.mxu0  ;;  %1565 = vmatprep.subr.bf16.mxu1 %v3399_v48  ;;  %v1286_v36 = vld [vmem:[%s5048_s10 + $0x60] sm:$0xff] }
 0xb02   : > { %v1239_v40 = vsel %vm484_vm0, %v4390_v37, 0.0  ;;  %1566 = vmatpush1.bf16.msra.mxu1 %v3398_v50  ;;  %v1279_v39 = vld [vmem:[%s5048_s10 + $0x28] sm:$0xff]  ;;  %v3390_v48 = vcombine.low %v1278_v35, %v1286_v36 }
 0xb03   : > { %1240 = vadd.xlane.f32.xlu1 %v1239_v40  ;;  %1567 = vmatprep.subr.bf16.mxu1 %v3383_v56  ;;  %v1287_v40 = vld [vmem:[%s5048_s10 + $0x68] sm:$0xff] }
 0xb04   : > { %v3392_v49 = vcombine.low %v1279_v39, %v1287_v40 }
 0xb06   : > { %1568 = vmatpush1.bf16.msra.mxu1 %v3382_v59  ;;  %v3395_v59 = vcombine.high %v1280_v52, %v1288_v53 }
 0xb07   : > { %1647 = vmatprep.subr.bf16.mxu1 %v3403_v2  ;;  %v3895_v2 = vld [vmem:[%s5050_s12 + $0x38] sm:$0xff]  }
 0xb8c   : > { %v1241_v41 = vpop.xlane.xlu1 %1240 }
 0xb8d   : > { %v1242_v42 = vmul.f32 0.03125, %v1241_v41  ;;  %v3406_v41 = vcombine.low %v1294_v26, %v1302_v27  ;;  %v3922_v26 = vld [vmem:[%s5050_s12 + $0xc0] sm:$0xff]  }
 0xb8e   : > { %v3923_v27 = vld [vmem:[%s5050_s12] sm:$0xff]  }
 0xb8f   : > { %v1243_v43 = vsub.f32 %v4390_v37, %v1242_v42  ;;  %v3408_v42 = vcombine.low %v1295_v28, %v1303_v30  ;;  %v3924_v28 = vld [vmem:[%s5050_s12 + $0x80] sm:$0xff]   ;;  %v3925_v30 = vld [vmem:[%s5050_s12 + $0x178] sm:$0xff]  }
 0xb91   : > { %v1244_v44 = vmul.f32 %v1243_v43, %v1243_v43 }
 0xb93   : > { %v1245_v45 = vsel %vm484_vm0, %v1244_v44, 0.0  ;;  %v3393_v44 = vcombine.high %v1279_v39, %v1287_v40 }
 0xb94   : > { %1246 = vadd.xlane.f32.xlu1 %v1245_v45  ;;  %v1296_v45 = vld [vmem:[%s5048_s10 + $0xb0] sm:$0xff] }
 0xb95   : > { %v3411_v50 = vcombine.high %v1296_v45, %v1304_v0  ;;  %v3410_v56 = vcombine.low %v1296_v45, %v1304_v0 }
 0xc1d   : > { %v1247_v7 = vpop.xlane.xlu1 %1246 }
 0xc1e   : > { %v1248_v9 = vmul.f32 0.032258064, %v1247_v7  ;;  %v3901_v7 = vld [vmem:[%s5050_s12 + $0x68] sm:$0xff]  }
 0xc20   : > { %4041 = vrsqrt.f32 %v1248_v9  ;;  %vm1251_vm6 = vcmp.eq.f32.partialorder %v1248_v9, inf  ;;  %v1254_v12 = vand.u32 2147483648, %v1248_v9  ;;  %vm1253_vm7 = vcmp.eq.f32.partialorder %v1248_v9, 0.0 }
 0xc2d   : > { %v4042_v10 = vpop.eup %4041 }
 0xc2e   : > { %v1250_v11 = vmul.f32 %v4042_v10, %v1248_v9  ;;  %v3903_v10 = vld [vmem:[%s5050_s12 + $0x28] sm:$0xff]  }
 0xc30   : > { %v1252_v13 = vsel %vm1251_vm6, %v1248_v9, %v1250_v11  ;;  %v3902_v9 = vld [vmem:[%s5050_s12 + $0xe8] sm:$0xff]  }
 0xc31   : > { %v1255_v14 = vsel %vm1253_vm7, %v1254_v12, %v1252_v13  ;;  %v3904_v11 = vld [vmem:[%s5050_s12 + $0xa8] sm:$0xff]   ;;  %v3905_v12 = vld [vmem:[%s5050_s12 + $0x60] sm:$0xff]  }
 0xc32   : > { %v1256_v8 = vadd.f32 1e-06, %v1255_v14  ;;  %v3906_v13 = vld [vmem:[%s5050_s12 + $0xe0] sm:$0xff]  }
 0xc33   : > { %v3907_v14 = vld [vmem:[%s5050_s12 + $0x20] sm:$0xff]  }
 0xc34   : > { %4043 = vrcp.f32 %v1256_v8  ;;  %v3908_v8 = vld [vmem:[%s5050_s12 + $0xa0] sm:$0xff]  }
 0xc41   : > { %v4044_v38 = vpop.eup %4043 }
 0xc42   : > { %v1258_v16 = vmul.f32 %v4044_v38, %v1243_v43  ;;  %v3391_v43 = vcombine.high %v1278_v35, %v1286_v36  ;;  %v3909_v38 = vld [vmem:[%s5050_s12 + $0x58] sm:$0xff]   ;;  %v4632_v35 = vld [vmem:[%s5049_s11 + $0x8] sm:$0xff] }
 0xc44   : > { %v1265_v18 = vmul.f32 %v3380_v15, %v1258_v16  ;;  %v3910_v15 = vld [vmem:[%s5050_s12 + $0xd8] sm:$0xff]  }
 0xc45   : > { %v3911_v16 = vld [vmem:[%s5050_s12 + $0x18] sm:$0xff]  }
 0xc46   : > { %v1272_v29 = vadd.f32 %v3381_v17, %v1265_v18  ;;  %v3912_v17 = vld [vmem:[%s5050_s12 + $0x98] sm:$0xff]   ;;  %v3913_v18 = vld [vmem:[%s5050_s12 + $0x50] sm:$0xff]  }
 0xc48   : > { %v4452_v23 = vpack.c.bf16 %v1272_v29, %v1272_v29  ;;  %v3918_v29 = vld [vmem:[%s5050_s12 + $0xc8] sm:$0xff]  }
 0xc4a   : > { %3414 = vmatmul.mubr.msk.bf16.vlgmr.msra.gmra.mxu1 %vm484_vm0, %v4452_v23  ;;  %3415 = vmatmul.mubr.msk.bf16.vlgmr.msra.gmra.mxu0 %vm484_vm0, %v4452_v23 }
 0xc4b   : > { %1648 = vmatpush1.bf16.msra.mxu1 %v3402_v4  ;;  %1689 = vmatpush1.bf16.msra.mxu0 %v3404_v5  ;;  %v3897_v4 = vld [vmem:[%s5050_s12 + $0x70] sm:$0xff]  }
 0xc4c   : > { %1649 = vmatprep.subr.bf16.mxu1 %v3387_v24  ;;  %1690 = vmatprep.subr.bf16.mxu0 %v3389_v25  ;;  %v3899_v5 = vld [vmem:[%s5050_s12 + $0x30] sm:$0xff]   ;;  %v3920_v24 = vld [vmem:[%s5050_s12 + $0x88] sm:$0xff]   ;;  %v3921_v25 = vld [vmem:[%s5050_s12 + $0x40] sm:$0xff]  }
 0xc4d   : > { %1667 = vmatprep.mubr.bf16.mxu1 %v4120_v58  ;;  %1708 = vmatprep.mubr.bf16.mxu0 %v4120_v58 }
 0xc4f   : > { %1650 = vmatpush1.bf16.msra.mxu1 %v3386_v31  ;;  %1691 = vmatpush1.bf16.msra.mxu0 %v3388_v32  ;;  %v3926_v31 = vld [vmem:[%s5050_s12 + $0x1f8] sm:$0xff]   ;;  %v1310_v32 = vlaneseq }
 0xc50   : > { %1729 = vmatprep.subr.bf16.mxu1 %v3407_v33  ;;  %1770 = vmatprep.subr.bf16.mxu0 %v3409_v34 }
 0xc51   : > { %v4626_v33 = vshrl.u32 %v1310_v32, 7 }
 0xc52   : > { %3416 = vmatmul.mubr.msk.bf16.vlgmr.msra.gmra.mxu1 %vm484_vm0, %v4452_v23  ;;  %3417 = vmatmul.mubr.msk.bf16.vlgmr.msra.gmra.mxu0 %vm484_vm0, %v4452_v23 }
 0xc53   : > { %1730 = vmatpush1.bf16.msra.mxu1 %v3406_v41  ;;  %1771 = vmatpush1.bf16.msra.mxu0 %v3408_v42  ;;  %v1336_v34 = vsub.s32 6, %v4626_v33  ;;  %v1312_v39 = vsub.s32 0, %v4626_v33  ;;  %v1320_v40 = vsub.s32 2, %v4626_v33  ;;  %v4644_v41 = vld [vmem:[%s5049_s11] sm:$0xff]  ;;  %v1316_v42 = vsub.s32 1, %v4626_v33 }
 0xc54   : > { %1731 = vmatprep.subr.bf16.mxu1 %v3391_v43  ;;  %1772 = vmatprep.subr.bf16.mxu0 %v3393_v44  ;;  %v1324_v43 = vsub.s32 3, %v4626_v33  ;;  %v1332_v55 = vsub.s32 5, %v4626_v33 }
 0xc55   : > { %1749 = vmatprep.mubr.bf16.mxu1 %v4120_v58  ;;  %1790 = vmatprep.mubr.bf16.mxu0 %v4120_v58  ;;  %v4637_v36 = vrot.slane %v4632_v35, %v1336_v34  ;;  %v1313_v44 = vrot.slane %v4644_v41, %v1312_v39  ;;  %v1321_v45 = vrot.slane %v4644_v41, %v1320_v40 }
 0xc56   : > { %v1317_v0 = vrot.slane %v4644_v41, %v1316_v42  ;;  %v1325_v46 = vrot.slane %v4644_v41, %v1324_v43 }
 0xc57   : > { %1732 = vmatpush1.bf16.msra.mxu1 %v3390_v48  ;;  %1773 = vmatpush1.bf16.msra.mxu0 %v3392_v49 }
 0xc58   : > { %1811 = vmatprep.subr.bf16.mxu1 %v3411_v50  ;;  %1852 = vmatprep.subr.bf16.mxu0 %v3413_v51 }
 0xc5a   : > { %3418 = vmatmul.mubr.msk.bf16.vlgmr.msra.gmra.mxu1 %vm484_vm0, %v4452_v23  ;;  %3419 = vmatmul.mubr.msk.bf16.vlgmr.msra.gmra.mxu0 %vm484_vm0, %v4452_v23 }
 0xc5b   : > { %1812 = vmatpush1.bf16.msra.mxu1 %v3410_v56  ;;  %1853 = vmatpush1.bf16.msra.mxu0 %v3412_v57  ;;  %v1340_v56 = vsub.s32 7, %v4626_v33 }
 0xc5c   : > { %1813 = vmatprep.subr.bf16.mxu1 %v3395_v59  ;;  %1854 = vmatprep.subr.bf16.mxu0 %v3397_v60 }
 0xc5d   : > { %1831 = vmatprep.mubr.bf16.mxu1 %v4120_v58  ;;  %1872 = vmatprep.mubr.bf16.mxu0 %v4120_v58  ;;  %v3898_v58 = vld [vmem:[%s5050_s12 + $0xf0] sm:$0xff]  }
 0xc5f   : > { %1814 = vmatpush1.bf16.msra.mxu1 %v3394_v61  ;;  %1855 = vmatpush1.bf16.msra.mxu0 %v3396_v62 }
 0xc60   : > { %3582 = vmatprep.subr.bf16.mxu1 %v3893_v63  ;;  %3604 = vmatprep.subr.bf16.mxu0 %v3894_v1 }
 0xc62   : > { %3420 = vmatmul.mubr.msk.bf16.vlgmr.msra.gmra.mxu1 %vm484_vm0, %v4452_v23  ;;  %3421 = vmatmul.mubr.msk.bf16.vlgmr.msra.gmra.mxu0 %vm484_vm0, %v4452_v23  ;;  %v3919_v23 = vld [vmem:[%s5050_s12 + $0x8] sm:$0xff]  }
 0xc63   : > { %3583 = vmatpush3.bf16.msra.mxu1 %v3895_v2  ;;  %3605 = vmatpush3.bf16.msra.mxu0 %v3896_v3 }
 0xc64   : > { %3584 = vmatprep.subr.bf16.mxu1 %v3897_v4  ;;  %3606 = vmatprep.subr.bf16.mxu0 %v3898_v58  ;;  %v1333_v58 = vrot.slane %v4644_v41, %v1332_v55 }
 0xc67   : > { %3585 = vmatpush3.bf16.msra.mxu1 %v3899_v5  ;;  %3607 = vmatpush3.bf16.msra.mxu0 %v3900_v6  ;;  %v1341_v5 = vrot.slane %v4644_v41, %v1340_v56  ;;  %v3927_v6 = vld [vmem:[%s5050_s12 + $0x138] sm:$0xff]  }
 0xc68   : > { %3586 = vmatprep.subr.bf16.mxu1 %v3901_v7  ;;  %3608 = vmatprep.subr.bf16.mxu0 %v3902_v9  ;;  %v3928_v7 = vld [vmem:[%s5050_s12 + $0x1b8] sm:$0xff]  }
 0xc6b   : > { %3587 = vmatpush3.bf16.msra.mxu1 %v3903_v10  ;;  %3609 = vmatpush3.bf16.msra.mxu0 %v3904_v11 }
 0xc6c   : > { %3588 = vmatprep.subr.bf16.mxu1 %v3905_v12  ;;  %3610 = vmatprep.subr.bf16.mxu0 %v3906_v13  ;;  %v3929_v13 = vld [vmem:[%s5050_s12 + $0x170] sm:$0xff]  }
 0xc6f   : > { %3589 = vmatpush3.bf16.msra.mxu1 %v3907_v14  ;;  %3611 = vmatpush3.bf16.msra.mxu0 %v3908_v8  ;;  %v3930_v14 = vld [vmem:[%s5050_s12 + $0x1f0] sm:$0xff]  }
 0xc70   : > { %3590 = vmatprep.subr.bf16.mxu1 %v3909_v38  ;;  %3612 = vmatprep.subr.bf16.mxu0 %v3910_v15 }
 0xc73   : > { %3591 = vmatpush3.bf16.msra.mxu1 %v3911_v16  ;;  %3613 = vmatpush3.bf16.msra.mxu0 %v3912_v17  ;;  %v3931_v17 = vld [vmem:[%s5050_s12 + $0x130] sm:$0xff]  }
 0xc74   : > { %3592 = vmatprep.subr.bf16.mxu1 %v3913_v18  ;;  %3614 = vmatprep.subr.bf16.mxu0 %v3914_v19  ;;  %v3932_v18 = vld [vmem:[%s5050_s12 + $0x1b0] sm:$0xff]  }
 0xc77   : > { %3593 = vmatpush3.bf16.msra.mxu1 %v3915_v20  ;;  %3615 = vmatpush3.bf16.msra.mxu0 %v3916_v21  ;;  %v3933_v21 = vld [vmem:[%s5050_s12 + $0x168] sm:$0xff]  }
 0xc78   : > { %3594 = vmatprep.subr.bf16.mxu1 %v3917_v22  ;;  %3616 = vmatprep.subr.bf16.mxu0 %v3918_v29  ;;  %v3934_v22 = vld [vmem:[%s5050_s12 + $0x1e8] sm:$0xff]  }
 0xc7b   : > { %3595 = vmatpush3.bf16.msra.mxu1 %v3919_v23  ;;  %3617 = vmatpush3.bf16.msra.mxu0 %v3920_v24 }
 0xc7c   : > { %3596 = vmatprep.subr.bf16.mxu1 %v3921_v25  ;;  %3618 = vmatprep.subr.bf16.mxu0 %v3922_v26 }
 0xc7f   : > { %3597 = vmatpush3.bf16.msra.mxu1 %v3923_v27  ;;  %3619 = vmatpush3.bf16.msra.mxu0 %v3924_v28  ;;  %v3935_v28 = vld [vmem:[%s5050_s12 + $0x128] sm:$0xff]  }
 0xc80   : > { %3626 = vmatprep.subr.bf16.mxu1 %v3925_v30  ;;  %3648 = vmatprep.subr.bf16.mxu0 %v3926_v31  ;;  %v3936_v30 = vld [vmem:[%s5050_s12 + $0x1a8] sm:$0xff]  }
 0xd0a   : > { %v1587_v47 = vpop.f32.mrf.mxu1  ;;  %v1628_v48 = vpop.f32.mrf.mxu0 }
 0xd0b   : > { %v1588_v49 = vadd.f32 %v1587_v47, %v1313_v44  ;;  %v1629_v50 = vadd.f32 %v1628_v48, %v1321_v45  ;;  %v3937_v44 = vld [vmem:[%s5050_s12 + $0x160] sm:$0xff]   ;;  %v1328_v47 = vsub.s32 4, %v4626_v33 }
 0xd0c   : > { %v1589_v51 = vpop.f32.mrf.mxu1  ;;  %v1630_v52 = vpop.f32.mrf.mxu0  ;;  %v3938_v45 = vld [vmem:[%s5050_s12 + $0x1e0] sm:$0xff]  }
 0xd0d   : > { %v1590_v53 = vadd.f32 %v1589_v51, %v1317_v0  ;;  %v1631_v54 = vadd.f32 %v1630_v52, %v1325_v46  ;;  %v1881_v57 = vmax.f32 %v1588_v49, 0.0  ;;  %v1883_v59 = vmax.f32 %v1629_v50, 0.0  ;;  %v3939_v48 = vld [vmem:[%s5050_s12 + $0x120] sm:$0xff]   ;;  %v3941_v52 = vld [vmem:[%s5050_s12 + $0x158] sm:$0xff]  }
 0xd0e   : > { %v1591_v60 = vpop.f32.mrf.mxu1  ;;  %v1632_v61 = vpop.f32.mrf.mxu0  ;;  %v3940_v49 = vld [vmem:[%s5050_s12 + $0x1a0] sm:$0xff]  }
 0xd0f   : > { %v1882_v62 = vmax.f32 %v1590_v53, 0.0  ;;  %v1884_v63 = vmax.f32 %v1631_v54, 0.0  ;;  %v1897_v9 = vpack.c.bf16 %v1881_v57, %v1881_v57  ;;  %v1899_v10 = vpack.c.bf16 %v1883_v59, %v1883_v59  ;;  %v3942_v53 = vld [vmem:[%s5050_s12 + $0x1d8] sm:$0xff]  }
 0xd10   : > { %v1592_v1 = vpop.f32.mrf.mxu1  ;;  %v1633_v2 = vpop.f32.mrf.mxu0  ;;  %v1361_v54 = vrot.slane %v4632_v35, %v1328_v47  ;;  %v3943_v60 = vld [vmem:[%s5050_s12 + $0x118] sm:$0xff]  }
 0xd11   : > { %v1898_v3 = vpack.c.bf16 %v1882_v62, %v1882_v62  ;;  %v1900_v4 = vpack.c.bf16 %v1884_v63, %v1884_v63  ;;  %v3944_v61 = vld [vmem:[%s5050_s12 + $0x198] sm:$0xff]   ;;  %v3945_v1 = vld [vmem:[%s5050_s12 + $0x150] sm:$0xff]  }
 0xd12   : > { %v4674_v11 = vpop.f32.mrf.mxu1  ;;  %v4676_v12 = vpop.f32.mrf.mxu0  ;;  %v3946_v2 = vld [vmem:[%s5050_s12 + $0x1d0] sm:$0xff]  }
 0xd13   : > { %2976 = vmatprep.mubr.bf16.mxu1 %v1898_v3  ;;  %3016 = vmatprep.mubr.bf16.mxu0 %v1900_v4 }
 0xd14   : > { %v1671_v8 = vpop.f32.mrf.mxu1  ;;  %v1712_v38 = vpop.f32.mrf.mxu0  ;;  %2977 = vmatmul.mubr.bf16.vlgmr.msra.gmra.mxu1 %v1897_v9  ;;  %3017 = vmatmul.mubr.bf16.vlgmr.msra.gmra.mxu0 %v1899_v10  ;;  %v1329_v9 = vrot.slane %v4644_v41, %v1328_v47 }
 0xd15   : > { %v1672_v15 = vadd.f32 %v1671_v8, %v1333_v58  ;;  %v1713_v16 = vadd.f32 %v1712_v38, %v1341_v5  ;;  %3627 = vmatpush3.bf16.msra.mxu1 %v3927_v6  ;;  %3649 = vmatpush3.bf16.msra.mxu0 %v3928_v7  ;;  %v3947_v6 = vld [vmem:[%s5050_s12 + $0x110] sm:$0xff]   ;;  %v3950_v8 = vld [vmem:[%s5050_s12 + $0x1c8] sm:$0xff]   ;;  %v1349_v38 = vrot.slane %v4632_v35, %v1316_v42 }
 0xd16   : > { %v1673_v19 = vpop.f32.mrf.mxu1  ;;  %v1714_v20 = vpop.f32.mrf.mxu0  ;;  %3628 = vmatprep.subr.bf16.mxu1 %v3929_v13  ;;  %3650 = vmatprep.subr.bf16.mxu0 %v3930_v14  ;;  %v3948_v7 = vld [vmem:[%s5050_s12 + $0x190] sm:$0xff]   ;;  %v3949_v14 = vld [vmem:[%s5050_s12 + $0x148] sm:$0xff]  }
 0xd17   : > { %v1886_v29 = vmax.f32 %v1672_v15, 0.0  ;;  %v1888_v23 = vmax.f32 %v1713_v16, 0.0  ;;  %v3951_v16 = vld [vmem:[%s5050_s12 + $0x108] sm:$0xff]   ;;  %v3954_v19 = vld [vmem:[%s5050_s12 + $0x1c0] sm:$0xff]  }
 0xd18   : > { %v1674_v24 = vpop.f32.mrf.mxu1  ;;  %v1715_v25 = vpop.f32.mrf.mxu0 }
 0xd19   : > { %v1902_v26 = vpack.c.bf16 %v1886_v29, %v1886_v29  ;;  %v1904_v27 = vpack.c.bf16 %v1888_v23, %v1888_v23  ;;  %3629 = vmatpush3.bf16.msra.mxu1 %v3931_v17  ;;  %3651 = vmatpush3.bf16.msra.mxu0 %v3932_v18  ;;  %v3952_v17 = vld [vmem:[%s5050_s12 + $0x188] sm:$0xff]   ;;  %v1670_v18 = vadd.f32 %v4674_v11, %v1329_v9  ;;  %v3955_v11 = vld [vmem:[%s5050_s12 + $0x100] sm:$0xff]   ;;  %v3957_v23 = vld [vmem:[%s5050_s12 + $0x278] sm:$0xff]  }
 0xd1a   : > { %v4702_v31 = vpop.f32.mrf.mxu1  ;;  %v4704_v32 = vpop.f32.mrf.mxu0  ;;  %3630 = vmatprep.subr.bf16.mxu1 %v3933_v21  ;;  %3652 = vmatprep.subr.bf16.mxu0 %v3934_v22  ;;  %v3958_v24 = vld [vmem:[%s5050_s12 + $0x2f8] sm:$0xff]   ;;  %v1345_v9 = vrot.slane %v4632_v35, %v1312_v39  ;;  %v1365_v39 = vrot.slane %v4632_v35, %v1332_v55  ;;  %v3985_v55 = vld [vmem:[%s5050_s12 + $0x240] sm:$0xff]  }
 0xd1b   : > { %3056 = vmatprep.mubr.bf16.mxu1 %v1902_v26  ;;  %3096 = vmatprep.mubr.bf16.mxu0 %v1904_v27  ;;  %v1885_v22 = vmax.f32 %v1670_v18, 0.0  ;;  %v3959_v27 = vld [vmem:[%s5050_s12 + $0x238] sm:$0xff]  }
 0xd1c   : > { %v1753_v0 = vpop.f32.mrf.mxu1  ;;  %v1794_v46 = vpop.f32.mrf.mxu0 }
 0xd1d   : > { %3631 = vmatpush3.bf16.msra.mxu1 %v3935_v28  ;;  %3653 = vmatpush3.bf16.msra.mxu0 %v3936_v30  ;;  %v1754_v20 = vadd.f32 %v1753_v0, %v1349_v38  ;;  %v1901_v28 = vpack.c.bf16 %v1885_v22, %v1885_v22  ;;  %v3961_v0 = vld [vmem:[%s5050_s12 + $0x270] sm:$0xff]   ;;  %v3983_v38 = vld [vmem:[%s5050_s12 + $0x208] sm:$0xff]  }
 0xd1e   : > { %v1755_v50 = vpop.f32.mrf.mxu1  ;;  %v1796_v51 = vpop.f32.mrf.mxu0  ;;  %3632 = vmatprep.subr.bf16.mxu1 %v3937_v44  ;;  %3654 = vmatprep.subr.bf16.mxu0 %v3938_v45  ;;  %v3960_v44 = vld [vmem:[%s5050_s12 + $0x2b8] sm:$0xff]  }
 0xd1f   : > { %v1890_v25 = vmax.f32 %v1754_v20, 0.0  ;;  %v3965_v50 = vld [vmem:[%s5050_s12 + $0x268] sm:$0xff]  }
 0xd20   : > { %v1756_v57 = vpop.f32.mrf.mxu1  ;;  %v1797_v59 = vpop.f32.mrf.mxu0  ;;  %v3966_v51 = vld [vmem:[%s5050_s12 + $0x2e8] sm:$0xff]  }
 0xd21   : > { %3633 = vmatpush3.bf16.msra.mxu1 %v3939_v48  ;;  %3655 = vmatpush3.bf16.msra.mxu0 %v3940_v49  ;;  %v1906_v45 = vpack.c.bf16 %v1890_v25, %v1890_v25  ;;  %v3963_v48 = vld [vmem:[%s5050_s12 + $0x230] sm:$0xff]   ;;  %v3970_v57 = vld [vmem:[%s5050_s12 + $0x2e0] sm:$0xff]   ;;  %v3998_v25 = vld [vmem:[%s5050_s12 + $0x3e8] sm:$0xff]  }
 0xd22   : > { %v1833_v62 = vpop.f32.mrf.mxu1  ;;  %v1874_v63 = vpop.f32.mrf.mxu0  ;;  %3634 = vmatprep.subr.bf16.mxu1 %v3941_v52  ;;  %3656 = vmatprep.subr.bf16.mxu0 %v3942_v53  ;;  %v3964_v49 = vld [vmem:[%s5050_s12 + $0x2b0] sm:$0xff]   ;;  %v3967_v52 = vld [vmem:[%s5050_s12 + $0x228] sm:$0xff]   ;;  %v3971_v59 = vld [vmem:[%s5050_s12 + $0x220] sm:$0xff]  }
 0xd23   : > { %v4738_v3 = vadd.f32 %v1833_v62, %v1361_v54  ;;  %v4741_v4 = vadd.f32 %v1874_v63, %v4637_v36  ;;  %v1337_v36 = vrot.slane %v4644_v41, %v1336_v34  ;;  %v1357_v34 = vrot.slane %v4632_v35, %v1324_v43  ;;  %v3953_v43 = vld [vmem:[%s5050_s12 + $0x140] sm:$0xff]   ;;  %v3968_v53 = vld [vmem:[%s5050_s12 + $0x2a8] sm:$0xff]   ;;  %v3974_v62 = vld [vmem:[%s5050_s12 + $0x2d8] sm:$0xff]  }
 0xd24   : > { %v4743_v58 = vpop.f32.mrf.mxu1  ;;  %v4745_v5 = vpop.f32.mrf.mxu0  ;;  %v3969_v54 = vld [vmem:[%s5050_s12 + $0x260] sm:$0xff]   ;;  %v3975_v63 = vld [vmem:[%s5050_s12 + $0x218] sm:$0xff]  }
 0xd25   : > { %3635 = vmatpush3.bf16.msra.mxu1 %v3943_v60  ;;  %3657 = vmatpush3.bf16.msra.mxu0 %v3944_v61  ;;  %v1711_v42 = vadd.f32 %v4676_v12, %v1337_v36  ;;  %v1795_v21 = vadd.f32 %v1794_v46, %v1357_v34  ;;  %v3956_v12 = vld [vmem:[%s5050_s12 + $0x180] sm:$0xff]   ;;  %v3962_v46 = vld [vmem:[%s5050_s12 + $0x2f0] sm:$0xff]   ;;  %v3973_v61 = vld [vmem:[%s5050_s12 + $0x258] sm:$0xff]  }
 0xd26   : > { %v1837_v10 = vpop.f32.mrf.mxu1  ;;  %v1878_v13 = vpop.f32.mrf.mxu0  ;;  %3636 = vmatprep.subr.bf16.mxu1 %v3945_v1  ;;  %3658 = vmatprep.subr.bf16.mxu0 %v3946_v2  ;;  %v3972_v60 = vld [vmem:[%s5050_s12 + $0x2a0] sm:$0xff]   ;;  %v3976_v1 = vld [vmem:[%s5050_s12 + $0x298] sm:$0xff]   ;;  %v3977_v2 = vld [vmem:[%s5050_s12 + $0x250] sm:$0xff]  }
 0xd27   : > { %v1887_v29 = vmax.f32 %v1711_v42, 0.0  ;;  %v1892_v26 = vmax.f32 %v1795_v21, 0.0  ;;  %v3980_v36 = vld [vmem:[%s5050_s12 + $0x290] sm:$0xff]   ;;  %v3981_v10 = vld [vmem:[%s5050_s12 + $0x248] sm:$0xff]   ;;  %v1353_v13 = vrot.slane %v4632_v35, %v1320_v40  ;;  %v1752_v40 = vadd.f32 %v4702_v31, %v1345_v9  ;;  %v3991_v42 = vld [vmem:[%s5050_s12 + $0x338] sm:$0xff]  }
 0xd28   : > { %v1838_v41 = vpop.f32.mrf.mxu1  ;;  %v1879_v15 = vpop.f32.mrf.mxu0  ;;  %v3984_v34 = vld [vmem:[%s5050_s12 + $0x288] sm:$0xff]   ;;  %v3993_v21 = vld [vmem:[%s5050_s12 + $0x370] sm:$0xff]  }
 0xd29   : > { %3637 = vmatpush3.bf16.msra.mxu1 %v3947_v6  ;;  %3659 = vmatpush3.bf16.msra.mxu0 %v3948_v7  ;;  %v1903_v30 = vpack.c.bf16 %v1887_v29, %v1887_v29  ;;  %v1908_v47 = vpack.c.bf16 %v1892_v26, %v1892_v26  ;;  %v3978_v6 = vld [vmem:[%s5050_s12 + $0x2d0] sm:$0xff]   ;;  %v1793_v33 = vadd.f32 %v4704_v32, %v1353_v13  ;;  %v3987_v41 = vld [vmem:[%s5050_s12 + $0x200] sm:$0xff]   ;;  %v1889_v15 = vmax.f32 %v1752_v40, 0.0  ;;  %v3999_v26 = vld [vmem:[%s5050_s12 + $0x328] sm:$0xff]  }
 0xd2a   : > { %3638 = vmatprep.subr.bf16.mxu1 %v3949_v14  ;;  %3660 = vmatprep.subr.bf16.mxu0 %v3950_v8  ;;  %v3979_v7 = vld [vmem:[%s5050_s12 + $0x210] sm:$0xff]   ;;  %v3982_v14 = vld [vmem:[%s5050_s12 + $0x2c8] sm:$0xff]   ;;  %v1373_v8 = vrot.slane %v4632_v35, %v1340_v56  ;;  %v3986_v35 = vld [vmem:[%s5050_s12 + $0x2c0] sm:$0xff]   ;;  %v1836_v56 = vadd.f32 %v4743_v58, %v1365_v39 }
 0xd2b   : > { %v3988_v32 = vld [vmem:[%s5050_s12 + $0x280] sm:$0xff]   ;;  %v3990_v58 = vld [vmem:[%s5050_s12 + $0x3f8] sm:$0xff]   ;;  %v3995_v29 = vld [vmem:[%s5050_s12 + $0x330] sm:$0xff]  }
 0xd2c   : > { %v1877_v31 = vadd.f32 %v4745_v5, %v1373_v8  ;;  %v1894_v5 = vmax.f32 %v1836_v56, 0.0 }
 0xd2d   : > { %3639 = vmatpush3.bf16.msra.mxu1 %v3951_v16  ;;  %3661 = vmatpush3.bf16.msra.mxu0 %v3952_v17  ;;  %v3989_v16 = vld [vmem:[%s5050_s12 + $0x378] sm:$0xff]   ;;  %v1891_v17 = vmax.f32 %v1793_v33, 0.0 }
 0xd2e   : > { %3640 = vmatprep.subr.bf16.mxu1 %v3953_v43  ;;  %3662 = vmatprep.subr.bf16.mxu0 %v3954_v19  ;;  %v1896_v18 = vmax.f32 %v1877_v31, 0.0  ;;  %v1905_v43 = vpack.c.bf16 %v1889_v15, %v1889_v15  ;;  %v3992_v19 = vld [vmem:[%s5050_s12 + $0x3b8] sm:$0xff]  }
 0xd2f   : > { %v1907_v20 = vpack.c.bf16 %v1891_v17, %v1891_v17 }
 0xd30   : > { %v1912_v22 = vpack.c.bf16 %v1896_v18, %v1896_v18 }
 0xd31   : > { %3641 = vmatpush3.bf16.msra.mxu1 %v3955_v11  ;;  %3663 = vmatpush3.bf16.msra.mxu0 %v3956_v12  ;;  %v1910_v11 = vpack.c.bf16 %v1894_v5, %v1894_v5  ;;  %v3994_v12 = vld [vmem:[%s5050_s12 + $0x3f0] sm:$0xff]  }
 0xd32   : > { %3670 = vmatprep.subr.bf16.mxu1 %v3957_v23  ;;  %3692 = vmatprep.subr.bf16.mxu0 %v3958_v24  ;;  %v3996_v23 = vld [vmem:[%s5050_s12 + $0x3b0] sm:$0xff]   ;;  %v3997_v24 = vld [vmem:[%s5050_s12 + $0x368] sm:$0xff]  }
 0xd34   : > { %3057 = vmatmul.mubr.bf16.vlgmr.msra.gmra.mxu1 %v1901_v28  ;;  %3097 = vmatmul.mubr.bf16.vlgmr.msra.gmra.mxu0 %v1903_v30  ;;  %v4001_v28 = vld [vmem:[%s5050_s12 + $0x360] sm:$0xff]  }
 0xd35   : > { %3671 = vmatpush3.bf16.msra.mxu1 %v3959_v27  ;;  %3136 = vmatprep.mubr.bf16.mxu1 %v1906_v45  ;;  %v4000_v27 = vld [vmem:[%s5050_s12 + $0x3a8] sm:$0xff]   ;;  %v4002_v30 = vld [vmem:[%s5050_s12 + $0x3e0] sm:$0xff]  }
 0xd36   : > { %3693 = vmatpush3.bf16.msra.mxu0 %v3960_v44  ;;  %3176 = vmatprep.mubr.bf16.mxu0 %v1908_v47  ;;  %v4003_v44 = vld [vmem:[%s5050_s12 + $0x320] sm:$0xff]   ;;  %v4007_v47 = vld [vmem:[%s5050_s12 + $0x318] sm:$0xff]  }
 0xd37   : > { %3672 = vmatprep.subr.bf16.mxu1 %v3961_v0  ;;  %3694 = vmatprep.subr.bf16.mxu0 %v3962_v46  ;;  %v4004_v45 = vld [vmem:[%s5050_s12 + $0x3a0] sm:$0xff]   ;;  %v4005_v0 = vld [vmem:[%s5050_s12 + $0x358] sm:$0xff]  }
 0xd38   : > { %v4006_v46 = vld [vmem:[%s5050_s12 + $0x3d8] sm:$0xff]  }
 0xd39   : > { %3673 = vmatpush3.bf16.msra.mxu1 %v3963_v48  ;;  %v4008_v48 = vld [vmem:[%s5050_s12 + $0x398] sm:$0xff]  }
 0xd3a   : > { %3695 = vmatpush3.bf16.msra.mxu0 %v3964_v49  ;;  %3674 = vmatprep.subr.bf16.mxu1 %v3965_v50  ;;  %v4009_v49 = vld [vmem:[%s5050_s12 + $0x350] sm:$0xff]  }
 0xd3b   : > { %3696 = vmatprep.subr.bf16.mxu0 %v3966_v51  ;;  %v4010_v50 = vld [vmem:[%s5050_s12 + $0x3d0] sm:$0xff]  }
 0xd3c   : > { %v4011_v51 = vld [vmem:[%s5050_s12 + $0x310] sm:$0xff]  }
 0xd3d   : > { %3675 = vmatpush3.bf16.msra.mxu1 %v3967_v52  ;;  %v4012_v52 = vld [vmem:[%s5050_s12 + $0x390] sm:$0xff]  }
 0xd3e   : > { %3697 = vmatpush3.bf16.msra.mxu0 %v3968_v53  ;;  %3676 = vmatprep.subr.bf16.mxu1 %v3969_v54  ;;  %v4013_v53 = vld [vmem:[%s5050_s12 + $0x348] sm:$0xff]  }
 0xd3f   : > { %3698 = vmatprep.subr.bf16.mxu0 %v3970_v57  ;;  %v4014_v54 = vld [vmem:[%s5050_s12 + $0x3c8] sm:$0xff]  }
 0xd40   : > { %v4015_v57 = vld [vmem:[%s5050_s12 + $0x308] sm:$0xff]  }
 0xd41   : > { %3677 = vmatpush3.bf16.msra.mxu1 %v3971_v59  ;;  %v4016_v59 = vld [vmem:[%s5050_s12 + $0x388] sm:$0xff]  }
 0xd42   : > { %3699 = vmatpush3.bf16.msra.mxu0 %v3972_v60  ;;  %3678 = vmatprep.subr.bf16.mxu1 %v3973_v61  ;;  %v4017_v60 = vld [vmem:[%s5050_s12 + $0x340] sm:$0xff]  }
 0xd43   : > { %3700 = vmatprep.subr.bf16.mxu0 %v3974_v62  ;;  %v4018_v61 = vld [vmem:[%s5050_s12 + $0x3c0] sm:$0xff]  }
 0xd44   : > { %v4019_v62 = vld [vmem:[%s5050_s12 + $0x300] sm:$0xff]  }
 0xd45   : > { %3679 = vmatpush3.bf16.msra.mxu1 %v3975_v63  ;;  %v1893_v63 = vmax.f32 %v4738_v3, 0.0  ;;  %v3422_v3 = vld [vmem:[%s5051_s13] ss:$0 sm:$0xff] }
 0xd46   : > { %3701 = vmatpush3.bf16.msra.mxu0 %v3976_v1  ;;  %3680 = vmatprep.subr.bf16.mxu1 %v3977_v2  ;;  %v4020_v1 = vld [vmem:[%s5050_s12 + $0x380] sm:$0xff]   ;;  %v1895_v2 = vmax.f32 %v4741_v4, 0.0 }
 0xd47   : > { %3702 = vmatprep.subr.bf16.mxu0 %v3978_v6  ;;  %v1909_v6 = vpack.c.bf16 %v1893_v63, %v1893_v63 }
 0xd49   : > { %3681 = vmatpush3.bf16.msra.mxu1 %v3979_v7  ;;  %v1911_v7 = vpack.c.bf16 %v1895_v2, %v1895_v2 }
 0xd4a   : > { %3703 = vmatpush3.bf16.msra.mxu0 %v3980_v36  ;;  %3682 = vmatprep.subr.bf16.mxu1 %v3981_v10 }
 0xd4b   : > { %3704 = vmatprep.subr.bf16.mxu0 %v3982_v14 }
 0xd4d   : > { %3683 = vmatpush3.bf16.msra.mxu1 %v3983_v38 }
 0xd4e   : > { %3705 = vmatpush3.bf16.msra.mxu0 %v3984_v34  ;;  %3684 = vmatprep.subr.bf16.mxu1 %v3985_v55 }
 0xd4f   : > { %3706 = vmatprep.subr.bf16.mxu0 %v3986_v35 }
 0xd51   : > { %3685 = vmatpush3.bf16.msra.mxu1 %v3987_v41 }
 0xd52   : > { %3707 = vmatpush3.bf16.msra.mxu0 %v3988_v32  ;;  %3714 = vmatprep.subr.bf16.mxu1 %v3989_v16 }
 0xd53   : > { %3736 = vmatprep.subr.bf16.mxu0 %v3990_v58 }
 0xd54   : > { %3137 = vmatmul.mubr.bf16.vlgmr.msra.gmra.mxu1 %v1905_v43 }
 0xd55   : > { %3177 = vmatmul.mubr.bf16.vlgmr.msra.gmra.mxu0 %v1907_v20  ;;  %3715 = vmatpush3.bf16.msra.mxu1 %v3991_v42 }
 0xd56   : > { %3216 = vmatprep.mubr.bf16.mxu1 %v1910_v11  ;;  %3737 = vmatpush3.bf16.msra.mxu0 %v3992_v19 }
 0xd57   : > { %3256 = vmatprep.mubr.bf16.mxu0 %v1912_v22  ;;  %3716 = vmatprep.subr.bf16.mxu1 %v3993_v21 }
 0xd58   : > { %3738 = vmatprep.subr.bf16.mxu0 %v3994_v12 }
 0xd59   : > { %3717 = vmatpush3.bf16.msra.mxu1 %v3995_v29 }
 0xd5a   : > { %3739 = vmatpush3.bf16.msra.mxu0 %v3996_v23  ;;  %3718 = vmatprep.subr.bf16.mxu1 %v3997_v24 }
 0xd5b   : > { %3740 = vmatprep.subr.bf16.mxu0 %v3998_v25 }
 0xd5d   : > { %3719 = vmatpush3.bf16.msra.mxu1 %v3999_v26 }
 0xd5e   : > { %3741 = vmatpush3.bf16.msra.mxu0 %v4000_v27  ;;  %3720 = vmatprep.subr.bf16.mxu1 %v4001_v28 }
 0xd5f   : > { %3742 = vmatprep.subr.bf16.mxu0 %v4002_v30 }
 0xd61   : > { %3721 = vmatpush3.bf16.msra.mxu1 %v4003_v44 }
 0xd62   : > { %3743 = vmatpush3.bf16.msra.mxu0 %v4004_v45  ;;  %3722 = vmatprep.subr.bf16.mxu1 %v4005_v0 }
 0xd63   : > { %3744 = vmatprep.subr.bf16.mxu0 %v4006_v46 }
 0xd65   : > { %3723 = vmatpush3.bf16.msra.mxu1 %v4007_v47 }
 0xd66   : > { %3745 = vmatpush3.bf16.msra.mxu0 %v4008_v48  ;;  %3724 = vmatprep.subr.bf16.mxu1 %v4009_v49 }
 0xd67   : > { %3746 = vmatprep.subr.bf16.mxu0 %v4010_v50 }
 0xd69   : > { %3725 = vmatpush3.bf16.msra.mxu1 %v4011_v51 }
 0xd6a   : > { %3747 = vmatpush3.bf16.msra.mxu0 %v4012_v52  ;;  %3726 = vmatprep.subr.bf16.mxu1 %v4013_v53 }
 0xd6b   : > { %3748 = vmatprep.subr.bf16.mxu0 %v4014_v54 }
 0xd6d   : > { %3727 = vmatpush3.bf16.msra.mxu1 %v4015_v57 }
 0xd6e   : > { %3749 = vmatpush3.bf16.msra.mxu0 %v4016_v59  ;;  %3728 = vmatprep.subr.bf16.mxu1 %v4017_v60 }
 0xd6f   : > { %3750 = vmatprep.subr.bf16.mxu0 %v4018_v61 }
 0xd71   : > { %3729 = vmatpush3.bf16.msra.mxu1 %v4019_v62 }
 0xd72   : > { %3751 = vmatpush3.bf16.msra.mxu0 %v4020_v1 }
 0xd74   : > { %3217 = vmatmul.mubr.bf16.vlgmr.msra.gmra.mxu1 %v1909_v6 }
 0xd75   : > { %3257 = vmatmul.mubr.bf16.vlgmr.msra.gmra.mxu0 %v1911_v7 }
 0xdd4   : > { %v3598_v9 = vpop.f32.mrf.mxu1  ;;  %v3620_v36 = vpop.f32.mrf.mxu0 }
 0xdd6   : > { %v3599_v10 = vpop.f32.mrf.mxu1  ;;  %v3621_v13 = vpop.f32.mrf.mxu0 }
 0xdd7   : > { %v3600_v14 = vadd.f32 %v3599_v10, %v3598_v9  ;;  %v3622_v39 = vadd.f32 %v3621_v13, %v3620_v36 }
 0xdd8   : > { %v3601_v8 = vpop.f32.mrf.mxu1  ;;  %v3623_v38 = vpop.f32.mrf.mxu0 }
 0xdd9   : > { %v2979_v4 = vadd.f32 %v3600_v14, %v3422_v3 }
 0xdda   : > { %v3602_v40 = vpop.f32.mrf.mxu1  ;;  %v3624_v34 = vpop.f32.mrf.mxu0 }
 0xddb   : > { %v3019_v55 = vadd.f32 %v3622_v39, %v2979_v4 }
 0xdf4   : > { %v3642_v33 = vpop.f32.mrf.mxu1  ;;  %v3664_v35 = vpop.f32.mrf.mxu0 }
 0xdf6   : > { %v3643_v56 = vpop.f32.mrf.mxu1  ;;  %v3665_v31 = vpop.f32.mrf.mxu0 }
 0xdf7   : > { %v3644_v21 = vadd.f32 %v3643_v56, %v3642_v33  ;;  %v3666_v12 = vadd.f32 %v3665_v31, %v3664_v35 }
 0xdf8   : > { %v3645_v41 = vpop.f32.mrf.mxu1  ;;  %v3667_v15 = vpop.f32.mrf.mxu0 }
 0xdf9   : > { %v3059_v11 = vadd.f32 %v3644_v21, %v3019_v55 }
 0xdfa   : > { %v3646_v32 = vpop.f32.mrf.mxu1  ;;  %v3668_v16 = vpop.f32.mrf.mxu0 }
 0xdfb   : > { %v3099_v29 = vadd.f32 %v3666_v12, %v3059_v11 }
 0xe14   : > { %v3686_v17 = vpop.f32.mrf.mxu1 }
 0xe15   : > { %v3708_v58 = vpop.f32.mrf.mxu0 }
 0xe16   : > { %v3687_v5 = vpop.f32.mrf.mxu1 }
 0xe17   : > { %v3709_v18 = vpop.f32.mrf.mxu0  ;;  %v3688_v22 = vadd.f32 %v3687_v5, %v3686_v17 }
 0xe18   : > { %v3689_v42 = vpop.f32.mrf.mxu1  ;;  %v3710_v25 = vadd.f32 %v3709_v18, %v3708_v58 }
 0xe19   : > { %v3711_v43 = vpop.f32.mrf.mxu0  ;;  %v3139_v23 = vadd.f32 %v3688_v22, %v3099_v29 }
 0xe1a   : > { %v3690_v19 = vpop.f32.mrf.mxu1 }
 0xe1b   : > { %v3712_v20 = vpop.f32.mrf.mxu0  ;;  %v3179_v28 = vadd.f32 %v3710_v25, %v3139_v23 }
 0xe34   : > { %v3730_v24 = vpop.f32.mrf.mxu1 }
 0xe35   : > { %v3752_v26 = vpop.f32.mrf.mxu0 }
 0xe36   : > { %v3731_v27 = vpop.f32.mrf.mxu1 }
 0xe37   : > { %v3732_v30 = vadd.f32 %v3731_v27, %v3730_v24  ;;  %v3753_v44 = vpop.f32.mrf.mxu0 }
 0xe38   : > { %v3733_v45 = vpop.f32.mrf.mxu1  ;;  %v3754_v46 = vadd.f32 %v3753_v44, %v3752_v26 }
 0xe39   : > { %v3219_v0 = vadd.f32 %v3732_v30, %v3179_v28  ;;  %v3755_v47 = vpop.f32.mrf.mxu0 }
 0xe3a   : > { %v3734_v48 = vpop.f32.mrf.mxu1 }
 0xe3b   : > { %v3259_v49 = vadd.f32 %v3754_v46, %v3219_v0  ;;  %v3756_v50 = vpop.f32.mrf.mxu0 }
 0xe3d   : > { %v3264_v51 = vadd.f32 %v3259_v49, %v4390_v37 }
 0xe3f   : > { %3265 = vst.msk [vmem:[%s471_s25] sm:$0xff] %vm484_vm0, %v3264_v51 }
 0xe40   : > { %4058 = shalt.err (!%p4055_p3)
}
 0xe41   : > { %s4059_s0 = scalar_lea.hbm %s3278_s2, 128  ;;  %s4063_s25 = scalar_lea.hbm %s5052_s14, 256 }
 0xe42   : > { %p4060_p4 = scmp.ne.s32.totalorder %s3278_s2, %s4059_s0  ;;  %p4064_p9 = scmp.lt.s32.totalorder %s3278_s2, %s5052_s14 }
 0xe43   : > { %p4065_p10 = scmp.lt.s32.totalorder %s4063_s25, %s4059_s0 }
 0xe44   : > { %p4061_p7 = pnand %p4060_p4, %p4235_p5 }
 0xe45   : > { %p4066_p11 = por %p4065_p10, %p4064_p9 }
 0xe46   : > { %p4062_p8 = pneg %p4061_p7 }
 0xe48   : > { %p4067_p12 = pnand %p4066_p11, %p4062_p8 }
 0xe4a   : > { %4070 = shalt.err (!%p4067_p12)
}
 0xe4b   : > { %3838 = dma.vmem_to_hbm [thread:$0]  (%p4235_p5), %s3281_s18, 128, %s3278_s2, %s3267_s20  }
 0xe4c PF: > { %p3844_p13 = scmp.ge.s32.totalorder %s4105_s16, 2  ;;  %s3292_s3 = sand.u32 1, %s4093_s29  }
 0xe4d   : > { %s3293_s21 = scalar_lea.sflag [#allocation3], %s3292_s3 }
 0xe4e   : > { %p3841_p0 = pnand %p3844_p13, %p4239_p6 }
 0xe50   : > { %p3842_p1 = pneg %p3841_p0 }
 0xe52   : > { %4088 = dma.done.wait (%p3842_p1), %s3293_s21, 128  }
 0xe53   : > { %4090 = vsyncadd (%p3842_p1), %s3293_s21, 4294967168  ;;  %p24_p2 = scmp.ge.s32.totalorder %s4222_s19, 4   ;;  %s5065_s29 = smov %s4097_s30 }
 0xe54   : > { %s5066_s30 = smov %s4101_s15  ;;  %s5067_s15 = smov %s4233_s22 }
 0xe55   : > { %s5068_s16 = smov %s4222_s19  ;;  %26 = sbr.rel (!%p24_p2) target bundleno = 9 (0x9), region = 117 }
 0xe5a   :  { %3298 = vsyncpa [#allocation3], 1 }
 0xe5b   :  { %3300 = vsyncpa [#allocation3 + $0x1], 1 }

</bundles_post_ra>
